<compile_context>
chip_gen: v6e
topology: v6e:2x2x1
jax: 0.10.0
libtpu: 0.0.40
codegen_flags: <defaults>
</compile_context>

<pallas_src>
import functools

import jax
import jax.numpy as jnp
from jax.experimental import pallas as pl
from jax.experimental.pallas import tpu as pltpu

# real / lane-padded dimensions
D_IN, D_IN_P = 784, 896       # 7 * 128
D_H,  D_H_P  = 400, 512       # 4 * 128
D_Z,  D_Z_P  = 20,  128       # 1 * 128
LV_OFF       = 64             # logvar lane offset inside the slim (128-lane) head


def _round_up(n, m):
    return (n + m - 1) // m * m


def _vae_kernel(x_ref, eps_ref,
                w1_ref, b1_ref,
                wh_ref, bh_ref,
                w3_ref, b3_ref,
                w4_ref, b4_ref,
                out_ref, ml_ref):
    # Encoder: h = relu(x @ W1 + b1)                          (TB, 512), f32 accum
    h = jnp.dot(x_ref[...], w1_ref[...],
                preferred_element_type=jnp.float32) + b1_ref[...]
    hb = jnp.maximum(h, 0.0).astype(jnp.bfloat16)

    # Slim fused mu/logvar head: one (512, 128) matmul.
    # Lanes [0:20) carry mu, lanes [64:84) carry logvar; all other lanes are exact zeros
    # because the padded weight/bias columns are zero.
    y = jnp.dot(hb, wh_ref[...],
                preferred_element_type=jnp.float32) + bh_ref[...]
    ml_ref[...] = y.astype(ml_ref.dtype)          # lane-dense (TB, 128) f32 store

    # Align logvar with mu/eps lanes via an XLU lane rotation (64 + 64 = 128, free slot).
    logvar = pltpu.roll(y, shift=LV_OFF, axis=1)

    # Reparametrize: z = eps * exp(0.5 * logvar) + mu.
    #   lanes [0:20)  : real values
    #   lanes [20:64) : eps=0, logvar=0, mu=0  -> z = 0
    #   lanes [64:84) : eps=0 -> z = y (logvar values); killed below by zero rows of w3
    #   lanes [84:128): all zeros
    z = eps_ref[...] * jnp.exp(0.5 * logvar) + y
    zb = z.astype(jnp.bfloat16)

    # Decoder: out = sigmoid(relu(z @ W3 + b3) @ W4 + b4)
    h3 = jnp.dot(zb, w3_ref[...],
                 preferred_element_type=jnp.float32) + b3_ref[...]
    h3b = jnp.maximum(h3, 0.0).astype(jnp.bfloat16)
    logits = jnp.dot(h3b, w4_ref[...],
                     preferred_element_type=jnp.float32) + b4_ref[...]
    out_ref[...] = jax.nn.sigmoid(logits).astype(out_ref.dtype)


def prepare_params(params):
    """One-time prep: pad to lane multiples, fuse fc21/fc22 into a slim 128-lane head,
    cast weights to bf16.  `params` holds (W, b) with W already transposed to
    (in_features, out_features)."""
    (w1, b1), (w21, b21), (w22, b22), (w3, b3), (w4, b4) = params

    def pad_w(w, rows, cols):
        out = jnp.zeros((rows, cols), jnp.float32)
        return out.at[:w.shape[0], :w.shape[1]].set(w)

    def pad_b(b, cols):
        out = jnp.zeros((1, cols), jnp.float32)
        return out.at[:, :b.shape[-1]].set(b.reshape(1, -1))

    w1p = pad_w(w1, D_IN_P, D_H_P).astype(jnp.bfloat16)
    b1p = pad_b(b1, D_H_P)

    # slim fused head weight: (512, 128); mu at lanes [0:20), logvar at [64:84)
    wh = jnp.zeros((D_H_P, D_Z_P), jnp.float32)
    wh = wh.at[:D_H, 0:D_Z].set(w21)
    wh = wh.at[:D_H, LV_OFF:LV_OFF + D_Z].set(w22)
    whp = wh.astype(jnp.bfloat16)
    bh = jnp.zeros((1, D_Z_P), jnp.float32)
    bh = bh.at[:, 0:D_Z].set(b21.reshape(1, -1))
    bh = bh.at[:, LV_OFF:LV_OFF + D_Z].set(b22.reshape(1, -1))

    w3p = pad_w(w3, D_Z_P, D_H_P).astype(jnp.bfloat16)   # zero pad rows kill z's garbage lanes
    b3p = pad_b(b3, D_H_P)
    w4p = pad_w(w4, D_H_P, D_IN_P).astype(jnp.bfloat16)
    b4p = pad_b(b4, D_IN_P)

    return (w1p, b1p, whp, bh, w3p, b3p, w4p, b4p)


def _vae_forward_impl(x, eps, prepped, *, block_b=None):
    """x: anything that flattens to (-1, 784); eps: (B, 20) ~ N(0,1)."""
    w1p, b1p, whp, bhp, w3p, b3p, w4p, b4p = prepped

    x = x.reshape(-1, D_IN)
    B = x.shape[0]
    if block_b is None:
        if B < 256:
            block_b = _round_up(max(B, 1), 8)          # single small tile
        else:
            # Big tiles for MXU utilization / amortized per-step overhead, but always
            # >= 2 grid steps so v7x's second TensorCore gets work.
            block_b = min(1024, _round_up(-(-B // 2), 128))
    Bp = _round_up(B, block_b)

    # lane- and batch-padded activations (x cast to bf16 here; fuses under jit)
    xp = jnp.zeros((Bp, D_IN_P), jnp.bfloat16).at[:B, :D_IN].set(x.astype(jnp.bfloat16))
    epsp = jnp.zeros((Bp, D_Z_P), jnp.float32).at[:B, :D_Z].set(eps.astype(jnp.float32))

    grid = (Bp // block_b,)

    def act_spec(n):
        return pl.BlockSpec((block_b, n), lambda i: (i, 0))

    def res_spec(r, c):
        # weights/biases: same block every grid step -> stay VMEM-resident
        return pl.BlockSpec((r, c), lambda i: (0, 0))

    flops = 2 * Bp * (D_IN_P * D_H_P + D_H_P * D_Z_P + D_Z_P * D_H_P + D_H_P * D_IN_P)
    transcendentals = Bp * (D_Z_P + D_IN_P)            # exp (reparam) + sigmoid
    weight_bytes = sum(int(a.size) * a.dtype.itemsize
                       for a in (w1p, b1p, whp, bhp, w3p, b3p, w4p, b4p))
    bytes_accessed = (Bp * D_IN_P * 2 + Bp * D_Z_P * 4        # x (bf16), eps (f32) in
                      + Bp * D_IN_P * 2 + Bp * D_Z_P * 4      # out (bf16), ml (f32) out
                      + weight_bytes)

    out_p, ml_p = pl.pallas_call(
        _vae_kernel,
        grid=grid,
        out_shape=(
            jax.ShapeDtypeStruct((Bp, D_IN_P), jnp.bfloat16),  # reconstruction, bf16 store
            jax.ShapeDtypeStruct((Bp, D_Z_P), jnp.float32),    # packed [mu | logvar], f32
        ),
        in_specs=[
            act_spec(D_IN_P),                 # x
            act_spec(D_Z_P),                  # eps
            res_spec(D_IN_P, D_H_P),          # w1
            res_spec(1, D_H_P),               # b1
            res_spec(D_H_P, D_Z_P),           # fused slim head weight
            res_spec(1, D_Z_P),               # fused slim head bias
            res_spec(D_Z_P, D_H_P),           # w3
            res_spec(1, D_H_P),               # b3
            res_spec(D_H_P, D_IN_P),          # w4
            res_spec(1, D_IN_P),              # b4
        ],
        out_specs=(act_spec(D_IN_P), act_spec(D_Z_P)),
        compiler_params=pltpu.CompilerParams(
            dimension_semantics=("parallel",),
            vmem_limit_bytes=32 << 20,
        ),
        cost_estimate=pl.CostEstimate(
            flops=flops,
            transcendentals=transcendentals,
            bytes_accessed=bytes_accessed,
        ),
    )(xp, epsp, w1p, b1p, whp, bhp, w3p, b3p, w4p, b4p)

    out = out_p[:B, :D_IN]
    mu = ml_p[:B, 0:D_Z]
    logvar = ml_p[:B, LV_OFF:LV_OFF + D_Z]
    return out, mu, logvar


# jit the whole wrapper so the pad/cast producers and the output slices fuse around
# the pallas call instead of being standalone HBM passes.
vae_forward = jax.jit(_vae_forward_impl, static_argnames=("block_b",))


def init_params(key):
    """Deterministic init mimicking nn.Linear default (uniform +-1/sqrt(fan_in)).
    Weights are returned already transposed to (in_features, out_features)."""
    def linear(key, fan_in, fan_out):
        kw, kb = jax.random.split(key)
        bound = 1.0 / jnp.sqrt(fan_in)
        w = jax.random.uniform(kw, (fan_in, fan_out), jnp.float32, -bound, bound)
        b = jax.random.uniform(kb, (1, fan_out), jnp.float32, -bound, bound)
        return w, b

    ks = jax.random.split(key, 5)
    return (
        linear(ks[0], D_IN, D_H),   # fc1
        linear(ks[1], D_H, D_Z),    # fc21 (mean)
        linear(ks[2], D_H, D_Z),    # fc22 (logvar)
        linear(ks[3], D_Z, D_H),    # fc3
        linear(ks[4], D_H, D_IN),   # fc4
    )


if __name__ == "__main__":
    key = jax.random.PRNGKey(0)
    k_param, k_x, k_eps = jax.random.split(key, 3)

    params = init_params(k_param)
    prepped = prepare_params(params)

    # small batch of MNIST-like inputs, shaped NCHW (B, 1, 28, 28)
    B = 8
    x = jax.random.uniform(k_x, (B, 1, 28, 28), jnp.float32)
    # TODO(synk): PyTorch samples eps inside forward(); here it is an explicit input.
    eps = jax.random.normal(k_eps, (B, D_Z), jnp.float32)

    out, mu, logvar = vae_forward(x, eps, prepped)
    jax.block_until_ready((out, mu, logvar))

    # Reference with matching bf16 matmul precision (pure JAX, unpadded).
    xf = x.reshape(-1, D_IN)
    (w1, b1), (w21, b21), (w22, b22), (w3, b3), (w4, b4) = params
    bf, f32 = jnp.bfloat16, jnp.float32
    xb = xf.astype(bf)
    h = jnp.maximum(jnp.dot(xb, w1.astype(bf), preferred_element_type=f32) + b1, 0.0)
    hb = h.astype(bf)
    mu_ref = jnp.dot(hb, w21.astype(bf), preferred_element_type=f32) + b21
    lv_ref = jnp.dot(hb, w22.astype(bf), preferred_element_type=f32) + b22
    z = eps * jnp.exp(0.5 * lv_ref) + mu_ref
    zb = z.astype(bf)
    h3 = jnp.maximum(jnp.dot(zb, w3.astype(bf), preferred_element_type=f32) + b3, 0.0)
    h3b = h3.astype(bf)
    out_ref = jax.nn.sigmoid(jnp.dot(h3b, w4.astype(bf), preferred_element_type=f32) + b4)

    assert out.shape == (B, D_IN) and mu.shape == (B, D_Z) and logvar.shape == (B, D_Z)
    assert jnp.allclose(out.astype(f32), out_ref, atol=1e-2, rtol=1e-2)   # out stored as bf16
    assert jnp.allclose(mu, mu_ref, atol=5e-3, rtol=5e-3)
    assert jnp.allclose(logvar, lv_ref, atol=5e-3, rtol=5e-3)

    print("KERNEL_OK")
</pallas_src>

<mosaic_0001>
module attributes {stable_mosaic.version = 11 : i64} {
  func.func @_vae_kernel(%arg0: i32, %arg1: memref<8x896xbf16, #tpu.memory_space<vmem>>, %arg2: memref<8x128xf32, #tpu.memory_space<vmem>>, %arg3: memref<896x512xbf16, #tpu.memory_space<vmem>>, %arg4: memref<1x512xf32, #tpu.memory_space<vmem>>, %arg5: memref<512x128xbf16, #tpu.memory_space<vmem>>, %arg6: memref<1x128xf32, #tpu.memory_space<vmem>>, %arg7: memref<128x512xbf16, #tpu.memory_space<vmem>>, %arg8: memref<1x512xf32, #tpu.memory_space<vmem>>, %arg9: memref<512x896xbf16, #tpu.memory_space<vmem>>, %arg10: memref<1x896xf32, #tpu.memory_space<vmem>>, %arg11: memref<8x896xbf16, #tpu.memory_space<vmem>>, %arg12: memref<8x128xf32, #tpu.memory_space<vmem>>) attributes {dimension_semantics = [#tpu.dimension_semantics<parallel>], iteration_bounds = array<i64: 1>, scalar_prefetch = 0 : i64, scratch_operands = 0 : i64, tpu.core_type = #tpu.core_type<tc>, window_params = [{transform_indices = @transform_0, window_bounds = array<i64: 8, 896>}, {transform_indices = @transform_1, window_bounds = array<i64: 8, 128>}, {pipeline_mode = #tpu.pipeline_mode<synchronous>, transform_indices = @transform_2, window_bounds = array<i64: 896, 512>}, {pipeline_mode = #tpu.pipeline_mode<synchronous>, transform_indices = @transform_3, window_bounds = array<i64: 1, 512>}, {pipeline_mode = #tpu.pipeline_mode<synchronous>, transform_indices = @transform_4, window_bounds = array<i64: 512, 128>}, {pipeline_mode = #tpu.pipeline_mode<synchronous>, transform_indices = @transform_5, window_bounds = array<i64: 1, 128>}, {pipeline_mode = #tpu.pipeline_mode<synchronous>, transform_indices = @transform_6, window_bounds = array<i64: 128, 512>}, {pipeline_mode = #tpu.pipeline_mode<synchronous>, transform_indices = @transform_7, window_bounds = array<i64: 1, 512>}, {pipeline_mode = #tpu.pipeline_mode<synchronous>, transform_indices = @transform_8, window_bounds = array<i64: 512, 896>}, {pipeline_mode = #tpu.pipeline_mode<synchronous>, transform_indices = @transform_9, window_bounds = array<i64: 1, 896>}, {transform_indices = @transform_10, window_bounds = array<i64: 8, 896>}, {transform_indices = @transform_11, window_bounds = array<i64: 8, 128>}]} {
    %c0 = arith.constant 0 : index
    %c0_0 = arith.constant 0 : index
    %0 = vector.load %arg1[%c0, %c0_0] : memref<8x896xbf16, #tpu.memory_space<vmem>>, vector<8x896xbf16>
    %c0_1 = arith.constant 0 : index
    %c0_2 = arith.constant 0 : index
    %1 = vector.load %arg3[%c0_1, %c0_2] : memref<896x512xbf16, #tpu.memory_space<vmem>>, vector<896x512xbf16>
    %cst = arith.constant dense<0.000000e+00> : vector<8x512xf32>
    %2 = tpu.matmul %0, %1, %cst {dimension_numbers = #tpu.dot_dimension_numbers<[1], [0], [0], [1], [0, 0, 1, 1], [], []>} : vector<8x896xbf16>, vector<896x512xbf16>, vector<8x512xf32> -> vector<8x512xf32>
    %c0_3 = arith.constant 0 : index
    %c0_4 = arith.constant 0 : index
    %3 = vector.load %arg4[%c0_3, %c0_4] : memref<1x512xf32, #tpu.memory_space<vmem>>, vector<1x512xf32>
    %4 = vector.broadcast %3 : vector<1x512xf32> to vector<8x512xf32>
    %5 = arith.addf %2, %4 : vector<8x512xf32>
    %cst_5 = arith.constant 0.000000e+00 : f32
    %6 = vector.broadcast %cst_5 : f32 to vector<8x512xf32>
    %7 = arith.maximumf %5, %6 : vector<8x512xf32>
    %8 = arith.truncf %7 : vector<8x512xf32> to vector<8x512xbf16>
    %c0_6 = arith.constant 0 : index
    %c0_7 = arith.constant 0 : index
    %9 = vector.load %arg5[%c0_6, %c0_7] : memref<512x128xbf16, #tpu.memory_space<vmem>>, vector<512x128xbf16>
    %cst_8 = arith.constant dense<0.000000e+00> : vector<8x128xf32>
    %10 = tpu.matmul %8, %9, %cst_8 {dimension_numbers = #tpu.dot_dimension_numbers<[1], [0], [0], [1], [0, 0, 1, 1], [], []>} : vector<8x512xbf16>, vector<512x128xbf16>, vector<8x128xf32> -> vector<8x128xf32>
    %c0_9 = arith.constant 0 : index
    %c0_10 = arith.constant 0 : index
    %11 = vector.load %arg6[%c0_9, %c0_10] : memref<1x128xf32, #tpu.memory_space<vmem>>, vector<1x128xf32>
    %12 = vector.broadcast %11 : vector<1x128xf32> to vector<8x128xf32>
    %13 = arith.addf %10, %12 : vector<8x128xf32>
    %c0_11 = arith.constant 0 : index
    %c0_12 = arith.constant 0 : index
    %14 = vector.load %arg12[%c0_11, %c0_12] : memref<8x128xf32, #tpu.memory_space<vmem>>, vector<8x128xf32>
    tpu.vector_store %arg12[%c0_11, %c0_12], %13 {strides = array<i32>} : memref<8x128xf32, #tpu.memory_space<vmem>>, vector<8x128xf32>,
    %c64_i32 = arith.constant 64 : i32
    %15 = tpu.dynamic_rotate %13 by %c64_i32 dim 1 : vector<8x128xf32>, i32 -> vector<8x128xf32>
    %c0_13 = arith.constant 0 : index
    %c0_14 = arith.constant 0 : index
    %16 = vector.load %arg2[%c0_13, %c0_14] : memref<8x128xf32, #tpu.memory_space<vmem>>, vector<8x128xf32>
    %cst_15 = arith.constant 5.000000e-01 : f32
    %17 = vector.broadcast %cst_15 : f32 to vector<8x128xf32>
    %18 = arith.mulf %17, %15 : vector<8x128xf32>
    %19 = math.exp %18 : vector<8x128xf32>
    %20 = arith.mulf %16, %19 : vector<8x128xf32>
    %21 = arith.addf %20, %13 : vector<8x128xf32>
    %22 = arith.truncf %21 : vector<8x128xf32> to vector<8x128xbf16>
    %c0_16 = arith.constant 0 : index
    %c0_17 = arith.constant 0 : index
    %23 = vector.load %arg7[%c0_16, %c0_17] : memref<128x512xbf16, #tpu.memory_space<vmem>>, vector<128x512xbf16>
    %cst_18 = arith.constant dense<0.000000e+00> : vector<8x512xf32>
    %24 = tpu.matmul %22, %23, %cst_18 {dimension_numbers = #tpu.dot_dimension_numbers<[1], [0], [0], [1], [0, 0, 1, 1], [], []>} : vector<8x128xbf16>, vector<128x512xbf16>, vector<8x512xf32> -> vector<8x512xf32>
    %c0_19 = arith.constant 0 : index
    %c0_20 = arith.constant 0 : index
    %25 = vector.load %arg8[%c0_19, %c0_20] : memref<1x512xf32, #tpu.memory_space<vmem>>, vector<1x512xf32>
    %26 = vector.broadcast %25 : vector<1x512xf32> to vector<8x512xf32>
    %27 = arith.addf %24, %26 : vector<8x512xf32>
    %cst_21 = arith.constant 0.000000e+00 : f32
    %28 = vector.broadcast %cst_21 : f32 to vector<8x512xf32>
    %29 = arith.maximumf %27, %28 : vector<8x512xf32>
    %30 = arith.truncf %29 : vector<8x512xf32> to vector<8x512xbf16>
    %c0_22 = arith.constant 0 : index
    %c0_23 = arith.constant 0 : index
    %31 = vector.load %arg9[%c0_22, %c0_23] : memref<512x896xbf16, #tpu.memory_space<vmem>>, vector<512x896xbf16>
    %cst_24 = arith.constant dense<0.000000e+00> : vector<8x896xf32>
    %32 = tpu.matmul %30, %31, %cst_24 {dimension_numbers = #tpu.dot_dimension_numbers<[1], [0], [0], [1], [0, 0, 1, 1], [], []>} : vector<8x512xbf16>, vector<512x896xbf16>, vector<8x896xf32> -> vector<8x896xf32>
    %c0_25 = arith.constant 0 : index
    %c0_26 = arith.constant 0 : index
    %33 = vector.load %arg10[%c0_25, %c0_26] : memref<1x896xf32, #tpu.memory_space<vmem>>, vector<1x896xf32>
    %34 = vector.broadcast %33 : vector<1x896xf32> to vector<8x896xf32>
    %35 = arith.addf %32, %34 : vector<8x896xf32>
    %36 = arith.negf %35 : vector<8x896xf32>
    %37 = math.exp %36 : vector<8x896xf32>
    %cst_27 = arith.constant 1.000000e+00 : f32
    %38 = vector.broadcast %cst_27 : f32 to vector<8x896xf32>
    %39 = arith.addf %38, %37 : vector<8x896xf32>
    %40 = arith.divf %38, %39 : vector<8x896xf32>
    %41 = arith.truncf %40 : vector<8x896xf32> to vector<8x896xbf16>
    %c0_28 = arith.constant 0 : index
    %c0_29 = arith.constant 0 : index
    %42 = vector.load %arg11[%c0_28, %c0_29] : memref<8x896xbf16, #tpu.memory_space<vmem>>, vector<8x896xbf16>
    tpu.vector_store %arg11[%c0_28, %c0_29], %41 {strides = array<i32>} : memref<8x896xbf16, #tpu.memory_space<vmem>>, vector<8x896xbf16>,
    return
  }
  func.func @transform_0(%arg0: i32) -> (i32, i32) {
    %c0_i32 = arith.constant 0 : i32
    %c0_i32_0 = arith.constant 0 : i32
    return %arg0, %c0_i32 : i32, i32
  }
  func.func @transform_1(%arg0: i32) -> (i32, i32) {
    %c0_i32 = arith.constant 0 : i32
    %c0_i32_0 = arith.constant 0 : i32
    return %arg0, %c0_i32 : i32, i32
  }
  func.func @transform_2(%arg0: i32) -> (i32, i32) {
    %c0_i32 = arith.constant 0 : i32
    %c0_i32_0 = arith.constant 0 : i32
    %c0_i32_1 = arith.constant 0 : i32
    return %c0_i32, %c0_i32_0 : i32, i32
  }
  func.func @transform_3(%arg0: i32) -> (i32, i32) {
    %c0_i32 = arith.constant 0 : i32
    %c0_i32_0 = arith.constant 0 : i32
    %c0_i32_1 = arith.constant 0 : i32
    return %c0_i32, %c0_i32_0 : i32, i32
  }
  func.func @transform_4(%arg0: i32) -> (i32, i32) {
    %c0_i32 = arith.constant 0 : i32
    %c0_i32_0 = arith.constant 0 : i32
    %c0_i32_1 = arith.constant 0 : i32
    return %c0_i32, %c0_i32_0 : i32, i32
  }
  func.func @transform_5(%arg0: i32) -> (i32, i32) {
    %c0_i32 = arith.constant 0 : i32
    %c0_i32_0 = arith.constant 0 : i32
    %c0_i32_1 = arith.constant 0 : i32
    return %c0_i32, %c0_i32_0 : i32, i32
  }
  func.func @transform_6(%arg0: i32) -> (i32, i32) {
    %c0_i32 = arith.constant 0 : i32
    %c0_i32_0 = arith.constant 0 : i32
    %c0_i32_1 = arith.constant 0 : i32
    return %c0_i32, %c0_i32_0 : i32, i32
  }
  func.func @transform_7(%arg0: i32) -> (i32, i32) {
    %c0_i32 = arith.constant 0 : i32
    %c0_i32_0 = arith.constant 0 : i32
    %c0_i32_1 = arith.constant 0 : i32
    return %c0_i32, %c0_i32_0 : i32, i32
  }
  func.func @transform_8(%arg0: i32) -> (i32, i32) {
    %c0_i32 = arith.constant 0 : i32
    %c0_i32_0 = arith.constant 0 : i32
    %c0_i32_1 = arith.constant 0 : i32
    return %c0_i32, %c0_i32_0 : i32, i32
  }
  func.func @transform_9(%arg0: i32) -> (i32, i32) {
    %c0_i32 = arith.constant 0 : i32
    %c0_i32_0 = arith.constant 0 : i32
    %c0_i32_1 = arith.constant 0 : i32
    return %c0_i32, %c0_i32_0 : i32, i32
  }
  func.func @transform_10(%arg0: i32) -> (i32, i32) {
    %c0_i32 = arith.constant 0 : i32
    %c0_i32_0 = arith.constant 0 : i32
    return %arg0, %c0_i32 : i32, i32
  }
  func.func @transform_11(%arg0: i32) -> (i32, i32) {
    %c0_i32 = arith.constant 0 : i32
    %c0_i32_0 = arith.constant 0 : i32
    return %arg0, %c0_i32 : i32, i32
  }
}

</mosaic_0001>

<bundles_post_ra>
// kernel: _vae_forward_impl.1
= control target key start
LH: loop header
LB: loop body
LE: loop exit
PB: predicated region body
PF: predicated region fallthrough
CT: control target
= control target key end

     0   :  { %17 = vsyncpa [#allocation3], 0  ;;  %s6192_s0 = inlined_call_operand.vmem [shape: bf16[8,896], index: 0, kind: input, shape index: {}]   ;;  %s6193_s1 = inlined_call_operand.vmem [shape: f32[8,128], index: 1, kind: input, shape index: {}]   ;;  %s6194_s2 = inlined_call_operand.hbm [shape: bf16[896,512], index: 2, kind: input, shape index: {}]   ;;  %s6195_s3 = inlined_call_operand.vmem [shape: f32[1,512], index: 3, kind: input, shape index: {}]   ;;  %s6196_s4 = inlined_call_operand.vmem [shape: bf16[512,128], index: 4, kind: input, shape index: {}]   ;;  %s6197_s5 = inlined_call_operand.vmem [shape: f32[1,128], index: 5, kind: input, shape index: {}]   ;;  %s6198_s6 = inlined_call_operand.vmem [shape: bf16[128,512], index: 6, kind: input, shape index: {}]   ;;  %s6199_s7 = inlined_call_operand.vmem [shape: f32[1,512], index: 7, kind: input, shape index: {}]   ;;  %s6200_s8 = inlined_call_operand.hbm [shape: bf16[512,896], index: 8, kind: input, shape index: {}]   ;;  %s6201_s9 = inlined_call_operand.vmem [shape: f32[1,896], index: 9, kind: input, shape index: {}]   ;;  %s6202_s10 = inlined_call_operand.hbm [shape: bf16[8,896], index: 10, kind: output, shape index: {0}]   ;;  %s6203_s11 = inlined_call_operand.vmem [shape: f32[8,128], index: 11, kind: output, shape index: {1}]  }
   0x1   :  { %18 = vsyncpa [#allocation6], 0 }
   0x2   :  { %19 = vsyncpa [#allocation4], 0  ;;  %s5793_s17 = smov [#allocation2]  }
   0x3   :  { %s29_s18 = sshll.u32 %s5793_s17, 4  ;;  %s30_s18 = int_to_ptr.vmem [resolvable:$true] %s29_s18 }
   0x4   :  { %s5735_s19 = scalar_lea.vmem %s30_s18, 28672  ;;  %p5740_p1 = scmp.lt.s32.totalorder %s30_s18, %s30_s18 }
   0x5   :  { %p5736_p0 = scmp.ne.s32.totalorder %s30_s18, %s5735_s19  ;;  %p5741_p2 = scmp.lt.s32.totalorder %s5735_s19, %s5735_s19 }
   0x7   :  { %p5742_p3 = por %p5741_p2, %p5740_p1 }
   0x9   :  { %p5743_p4 = pnand %p5742_p3, %p5736_p0 }
   0xb   :  { %5746 = shalt.err (!%p5743_p4)
}
   0xc   :  { %s5794_s20 = smov 256   ;;  %s5795_s21 = smov 16  }
   0xd   :  { %35 = dma.hbm_to_vmem [thread:$0]  %s6194_s2, 28672, %s30_s18, [#allocation3], %s5794_s20, %s5794_s20, %s5795_s21  }
   0xe   :  { %s5796_s24 = smov [#allocation5]  }
   0xf   :  { %s51_s25 = sshll.u32 %s5796_s24, 4  ;;  %s52_s25 = int_to_ptr.vmem [resolvable:$true] %s51_s25 }
  0x10   :  { %s5755_s26 = scalar_lea.vmem %s52_s25, 28672  ;;  %p5760_p6 = scmp.lt.s32.totalorder %s52_s25, %s52_s25 }
  0x11   :  { %p5756_p5 = scmp.ne.s32.totalorder %s52_s25, %s5755_s26  ;;  %p5761_p7 = scmp.lt.s32.totalorder %s5755_s26, %s5755_s26 }
  0x13   :  { %p5762_p8 = por %p5761_p7, %p5760_p6 }
  0x15   :  { %p5763_p9 = pnand %p5762_p8, %p5756_p5 }
  0x17   :  { %5766 = shalt.err (!%p5763_p9)
}
  0x18   :  { %s5797_s27 = smov 448   ;;  %s5798_s28 = smov 28  }
  0x19   :  { %57 = dma.hbm_to_vmem [thread:$0]  %s6200_s8, 28672, %s52_s25, [#allocation6], %s5797_s27, %s5797_s27, %s5798_s28  }
  0x1a   :  { %5787 = dma.done.wait [#allocation3], 28672  }
  0x1b   :  { %5788 = vsyncadd [#allocation3], 4294938624 }
  0x1c   :  { %5789 = dma.done.wait [#allocation6], 28672  }
  0x1d   :  { %5790 = vsyncadd [#allocation6], 4294938624  ;;  %v4953_v0 = vld [vmem:[#allocation2 + $0xe4] ss:$16 sps:$4 sm:$0xff]   ;;  %v4957_v2 = vld [vmem:[#allocation2 + $0xe0] ss:$16 sps:$4 sm:$0xff]  }
  0x1e   :  { %v4955_v1 = vld [vmem:[#allocation2 + $0x2e4] ss:$16 sps:$4 sm:$0xff]   ;;  %1462 = vmatprep.subr.bf16.mxu0 %v4953_v0  ;;  %v4958_v3 = vld [vmem:[#allocation2 + $0x2e0] ss:$16 sps:$4 sm:$0xff]   ;;  %v68_v48 = vld [vmem:[%s6192_s0 + $0x8] sm:$0xff]  ;;  %s5800_s25 = smov 64  }
  0x1f   :  { %1503 = vmatprep.subr.bf16.mxu1 %v4955_v1  ;;  %v4959_v4 = vld [vmem:[#allocation2 + $0xc4] ss:$16 sps:$4 sm:$0xff]   ;;  %1463 = vmatpush1.bf16.msra.mxu0 %v4957_v2  ;;  %v4963_v6 = vld [vmem:[#allocation2 + $0xc0] ss:$16 sps:$4 sm:$0xff]   ;;  %v5876_v51 = vcombine.high %v68_v48, %v68_v48 }
  0x20   :  { %1504 = vmatpush1.bf16.msra.mxu1 %v4958_v3  ;;  %v4961_v5 = vld [vmem:[#allocation2 + $0x2c4] ss:$16 sps:$4 sm:$0xff]   ;;  %1464 = vmatprep.subr.bf16.mxu0 %v4959_v4  ;;  %v4964_v7 = vld [vmem:[#allocation2 + $0x2c0] ss:$16 sps:$4 sm:$0xff]  }
  0x21   :  { %1505 = vmatprep.subr.bf16.mxu1 %v4961_v5  ;;  %v4965_v8 = vld [vmem:[#allocation2 + $0xa4] ss:$16 sps:$4 sm:$0xff]   ;;  %v4969_v10 = vld [vmem:[#allocation2 + $0xa0] ss:$16 sps:$4 sm:$0xff]   ;;  %1535 = vmatprep.mubr.bf16.mxu1 %v5876_v51 }
  0x22   :  { %v4967_v9 = vld [vmem:[#allocation2 + $0x2a4] ss:$16 sps:$4 sm:$0xff]   ;;  %v4970_v11 = vld [vmem:[#allocation2 + $0x2a0] ss:$16 sps:$4 sm:$0xff]  }
  0x23   :  { %1465 = vmatpush1.bf16.msra.mxu0 %v4963_v6  ;;  %v4971_v12 = vld [vmem:[#allocation2 + $0x84] ss:$16 sps:$4 sm:$0xff]   ;;  %v4975_v14 = vld [vmem:[#allocation2 + $0x80] ss:$16 sps:$4 sm:$0xff]  }
  0x24   :  { %1506 = vmatpush1.bf16.msra.mxu1 %v4964_v7  ;;  %1466 = vmatprep.subr.bf16.mxu0 %v4965_v8  ;;  %v4973_v13 = vld [vmem:[#allocation2 + $0x284] ss:$16 sps:$4 sm:$0xff]   ;;  %v4976_v15 = vld [vmem:[#allocation2 + $0x280] ss:$16 sps:$4 sm:$0xff]   ;;  %v5882_v7 = vcombine.low %v68_v48, %v68_v48  ;;  %v5113_v48 = vld [vmem:[#allocation2 + $0xcc] ss:$16 sps:$4 sm:$0xff]  }
  0x25   :  { %1507 = vmatprep.subr.bf16.mxu1 %v4967_v9  ;;  %v4977_v16 = vld [vmem:[#allocation2 + $0x64] ss:$16 sps:$4 sm:$0xff]   ;;  %v4981_v18 = vld [vmem:[#allocation2 + $0x60] ss:$16 sps:$4 sm:$0xff]  }
  0x26   :  { %v4979_v17 = vld [vmem:[#allocation2 + $0x264] ss:$16 sps:$4 sm:$0xff]   ;;  %v4982_v19 = vld [vmem:[#allocation2 + $0x260] ss:$16 sps:$4 sm:$0xff]  }
  0x27   :  { %1467 = vmatpush1.bf16.msra.mxu0 %v4969_v10  ;;  %v4983_v20 = vld [vmem:[#allocation2 + $0x44] ss:$16 sps:$4 sm:$0xff]   ;;  %v4987_v22 = vld [vmem:[#allocation2 + $0x40] ss:$16 sps:$4 sm:$0xff]  }
  0x28   :  { %1508 = vmatpush1.bf16.msra.mxu1 %v4970_v11  ;;  %1468 = vmatprep.subr.bf16.mxu0 %v4971_v12  ;;  %v4985_v21 = vld [vmem:[#allocation2 + $0x244] ss:$16 sps:$4 sm:$0xff]   ;;  %v4988_v23 = vld [vmem:[#allocation2 + $0x240] ss:$16 sps:$4 sm:$0xff]  }
  0x29   :  { %1509 = vmatprep.subr.bf16.mxu1 %v4973_v13  ;;  %v4989_v24 = vld [vmem:[#allocation2 + $0x24] ss:$16 sps:$4 sm:$0xff]   ;;  %v4993_v26 = vld [vmem:[#allocation2 + $0x20] ss:$16 sps:$4 sm:$0xff]  }
  0x2a   :  { %v4991_v25 = vld [vmem:[#allocation2 + $0x224] ss:$16 sps:$4 sm:$0xff]   ;;  %v4994_v27 = vld [vmem:[#allocation2 + $0x220] ss:$16 sps:$4 sm:$0xff]  }
  0x2b   :  { %1469 = vmatpush1.bf16.msra.mxu0 %v4975_v14  ;;  %v4995_v28 = vld [vmem:[#allocation2 + $0x4] ss:$16 sps:$4 sm:$0xff]   ;;  %v4999_v30 = vld [vmem:[#allocation2] ss:$16 sps:$4 sm:$0xff]  }
  0x2c   :  { %1510 = vmatpush1.bf16.msra.mxu1 %v4976_v15  ;;  %1470 = vmatprep.subr.bf16.mxu0 %v4977_v16  ;;  %v4997_v29 = vld [vmem:[#allocation2 + $0x204] ss:$16 sps:$4 sm:$0xff]   ;;  %v5000_v31 = vld [vmem:[#allocation2 + $0x200] ss:$16 sps:$4 sm:$0xff]   ;;  %v5799_v16 = vmov 0  }
  0x2d   :  { %1511 = vmatprep.subr.bf16.mxu1 %v4979_v17  ;;  %v5001_v32 = vld [vmem:[#allocation2 + $0x1e4] ss:$16 sps:$4 sm:$0xff]   ;;  %v5005_v34 = vld [vmem:[#allocation2 + $0x1e0] ss:$16 sps:$4 sm:$0xff]  }
  0x2e   :  { %v5003_v33 = vld [vmem:[#allocation2 + $0x3e4] ss:$16 sps:$4 sm:$0xff]   ;;  %v5006_v35 = vld [vmem:[#allocation2 + $0x3e0] ss:$16 sps:$4 sm:$0xff]  }
  0x2f   :  { %1471 = vmatpush1.bf16.msra.mxu0 %v4981_v18  ;;  %v5007_v36 = vld [vmem:[#allocation2 + $0x1c4] ss:$16 sps:$4 sm:$0xff]   ;;  %v5011_v38 = vld [vmem:[#allocation2 + $0x1c0] ss:$16 sps:$4 sm:$0xff]  }
  0x30   :  { %1512 = vmatpush1.bf16.msra.mxu1 %v4982_v19  ;;  %1472 = vmatprep.subr.bf16.mxu0 %v4983_v20  ;;  %v5009_v37 = vld [vmem:[#allocation2 + $0x3c4] ss:$16 sps:$4 sm:$0xff]   ;;  %v5012_v39 = vld [vmem:[#allocation2 + $0x3c0] ss:$16 sps:$4 sm:$0xff]  }
  0x31   :  { %1513 = vmatprep.subr.bf16.mxu1 %v4985_v21  ;;  %v5013_v40 = vld [vmem:[#allocation2 + $0x1a4] ss:$16 sps:$4 sm:$0xff]   ;;  %v5017_v42 = vld [vmem:[#allocation2 + $0x1a0] ss:$16 sps:$4 sm:$0xff]  }
  0x32   :  { %v5015_v41 = vld [vmem:[#allocation2 + $0x3a4] ss:$16 sps:$4 sm:$0xff]   ;;  %v5018_v43 = vld [vmem:[#allocation2 + $0x3a0] ss:$16 sps:$4 sm:$0xff]  }
  0x33   :  { %1473 = vmatpush1.bf16.msra.mxu0 %v4987_v22  ;;  %v5019_v44 = vld [vmem:[#allocation2 + $0x184] ss:$16 sps:$4 sm:$0xff]   ;;  %v5023_v49 = vld [vmem:[#allocation2 + $0x180] ss:$16 sps:$4 sm:$0xff]  }
  0x34   :  { %1514 = vmatpush1.bf16.msra.mxu1 %v4988_v23  ;;  %1474 = vmatprep.subr.bf16.mxu0 %v4989_v24  ;;  %v5021_v45 = vld [vmem:[#allocation2 + $0x384] ss:$16 sps:$4 sm:$0xff]   ;;  %v5024_v50 = vld [vmem:[#allocation2 + $0x380] ss:$16 sps:$4 sm:$0xff]  }
  0x35   :  { %1515 = vmatprep.subr.bf16.mxu1 %v4991_v25  ;;  %v67_v46 = vld [vmem:[%s6192_s0] sm:$0xff] }
  0x36   :  { %v5871_v47 = vcombine.high %v67_v46, %v67_v46  ;;  %v5025_v52 = vld [vmem:[#allocation2 + $0x164] ss:$16 sps:$4 sm:$0xff]   ;;  %v5029_v54 = vld [vmem:[#allocation2 + $0x160] ss:$16 sps:$4 sm:$0xff]   ;;  %v5880_v6 = vcombine.low %v67_v46, %v67_v46 }
  0x37   :  { %1475 = vmatpush1.bf16.msra.mxu0 %v4993_v26  ;;  %v5027_v53 = vld [vmem:[#allocation2 + $0x364] ss:$16 sps:$4 sm:$0xff]   ;;  %v5030_v55 = vld [vmem:[#allocation2 + $0x360] ss:$16 sps:$4 sm:$0xff]  }
  0x38   :  { %1516 = vmatpush1.bf16.msra.mxu1 %v4994_v27  ;;  %1476 = vmatprep.subr.bf16.mxu0 %v4995_v28  ;;  %v5031_v56 = vld [vmem:[#allocation2 + $0x144] ss:$16 sps:$4 sm:$0xff]   ;;  %v5035_v58 = vld [vmem:[#allocation2 + $0x140] ss:$16 sps:$4 sm:$0xff]  }
  0x39   :  { %1517 = vmatprep.subr.bf16.mxu1 %v4997_v29  ;;  %1494 = vmatprep.mubr.bf16.mxu0 %v5871_v47  ;;  %v5033_v57 = vld [vmem:[#allocation2 + $0x344] ss:$16 sps:$4 sm:$0xff]   ;;  %v5036_v59 = vld [vmem:[#allocation2 + $0x340] ss:$16 sps:$4 sm:$0xff]  }
  0x3a   :  { %v5037_v60 = vld [vmem:[#allocation2 + $0x124] ss:$16 sps:$4 sm:$0xff]   ;;  %v5041_v62 = vld [vmem:[#allocation2 + $0x120] ss:$16 sps:$4 sm:$0xff]  }
  0x3b   :  { %1477 = vmatpush1.bf16.msra.mxu0 %v4999_v30  ;;  %v5039_v61 = vld [vmem:[#allocation2 + $0x324] ss:$16 sps:$4 sm:$0xff]   ;;  %v5042_v63 = vld [vmem:[#allocation2 + $0x320] ss:$16 sps:$4 sm:$0xff]  }
  0x3c   :  { %1518 = vmatpush1.bf16.msra.mxu1 %v5000_v31  ;;  %1478 = vmatprep.subr.bf16.mxu0 %v5001_v32  ;;  %v5043_v0 = vld [vmem:[#allocation2 + $0x104] ss:$16 sps:$4 sm:$0xff]   ;;  %v5047_v2 = vld [vmem:[#allocation2 + $0x100] ss:$16 sps:$4 sm:$0xff]  }
  0x3d   :  { %1519 = vmatprep.subr.bf16.mxu1 %v5003_v33  ;;  %v5045_v1 = vld [vmem:[#allocation2 + $0x304] ss:$16 sps:$4 sm:$0xff]   ;;  %v5048_v3 = vld [vmem:[#allocation2 + $0x300] ss:$16 sps:$4 sm:$0xff]  }
  0x3e   :  { %v5055_v4 = vld [vmem:[#allocation2 + $0x4e4] ss:$16 sps:$4 sm:$0xff]   ;;  %v5053_v8 = vld [vmem:[#allocation2 + $0x4e0] ss:$16 sps:$4 sm:$0xff]  }
  0x3f   :  { %1479 = vmatpush2.bf16.msra.mxu0 %v5005_v34  ;;  %v5058_v5 = vld [vmem:[#allocation2 + $0x6e4] ss:$16 sps:$4 sm:$0xff]   ;;  %v5056_v9 = vld [vmem:[#allocation2 + $0x6e0] ss:$16 sps:$4 sm:$0xff]  }
  0x40   :  { %1520 = vmatpush2.bf16.msra.mxu1 %v5006_v35  ;;  %1480 = vmatprep.subr.bf16.mxu0 %v5007_v36  ;;  %v5061_v10 = vld [vmem:[#allocation2 + $0x4c4] ss:$16 sps:$4 sm:$0xff]   ;;  %v5059_v12 = vld [vmem:[#allocation2 + $0x4c0] ss:$16 sps:$4 sm:$0xff]  }
  0x41   :  { %1521 = vmatprep.subr.bf16.mxu1 %v5009_v37  ;;  %v5064_v11 = vld [vmem:[#allocation2 + $0x6c4] ss:$16 sps:$4 sm:$0xff]   ;;  %v5062_v13 = vld [vmem:[#allocation2 + $0x6c0] ss:$16 sps:$4 sm:$0xff]  }
  0x42   :  { %v5067_v14 = vld [vmem:[#allocation2 + $0x4a4] ss:$16 sps:$4 sm:$0xff]   ;;  %v5065_v17 = vld [vmem:[#allocation2 + $0x4a0] ss:$16 sps:$4 sm:$0xff]  }
  0x43   :  { %1481 = vmatpush2.bf16.msra.mxu0 %v5011_v38  ;;  %v5070_v15 = vld [vmem:[#allocation2 + $0x6a4] ss:$16 sps:$4 sm:$0xff]   ;;  %v5068_v18 = vld [vmem:[#allocation2 + $0x6a0] ss:$16 sps:$4 sm:$0xff]  }
  0x44   :  { %1522 = vmatpush2.bf16.msra.mxu1 %v5012_v39  ;;  %1482 = vmatprep.subr.bf16.mxu0 %v5013_v40  ;;  %v5073_v19 = vld [vmem:[#allocation2 + $0x484] ss:$16 sps:$4 sm:$0xff]   ;;  %v5071_v21 = vld [vmem:[#allocation2 + $0x480] ss:$16 sps:$4 sm:$0xff]  }
  0x45   :  { %1523 = vmatprep.subr.bf16.mxu1 %v5015_v41  ;;  %v5076_v20 = vld [vmem:[#allocation2 + $0x684] ss:$16 sps:$4 sm:$0xff]   ;;  %v5074_v22 = vld [vmem:[#allocation2 + $0x680] ss:$16 sps:$4 sm:$0xff]  }
  0x46   :  { %v5079_v23 = vld [vmem:[#allocation2 + $0x464] ss:$16 sps:$4 sm:$0xff]   ;;  %v5077_v25 = vld [vmem:[#allocation2 + $0x460] ss:$16 sps:$4 sm:$0xff]  }
  0x47   :  { %1483 = vmatpush2.bf16.msra.mxu0 %v5017_v42  ;;  %v5082_v24 = vld [vmem:[#allocation2 + $0x664] ss:$16 sps:$4 sm:$0xff]   ;;  %v5080_v26 = vld [vmem:[#allocation2 + $0x660] ss:$16 sps:$4 sm:$0xff]   ;;  %v5107_v42 = vld [vmem:[#allocation2 + $0xec] ss:$16 sps:$4 sm:$0xff]  }
  0x48   :  { %1524 = vmatpush2.bf16.msra.mxu1 %v5018_v43  ;;  %1484 = vmatprep.subr.bf16.mxu0 %v5019_v44  ;;  %v5085_v27 = vld [vmem:[#allocation2 + $0x444] ss:$16 sps:$4 sm:$0xff]   ;;  %v5083_v29 = vld [vmem:[#allocation2 + $0x440] ss:$16 sps:$4 sm:$0xff]   ;;  %v5104_v44 = vld [vmem:[%s6192_s0 + $0x18] ss:$0 sps:$4 sm:$0xff]  }
  0x49   :  { %1525 = vmatprep.subr.bf16.mxu1 %v5021_v45  ;;  %v5088_v28 = vld [vmem:[#allocation2 + $0x644] ss:$16 sps:$4 sm:$0xff]   ;;  %v5086_v30 = vld [vmem:[#allocation2 + $0x640] ss:$16 sps:$4 sm:$0xff]   ;;  %v5105_v45 = vld [vmem:[#allocation2 + $0xe8] ss:$16 sps:$4 sm:$0xff]  }
  0x4a   :  { %v5091_v31 = vld [vmem:[#allocation2 + $0x424] ss:$16 sps:$4 sm:$0xff]   ;;  %v5089_v34 = vld [vmem:[#allocation2 + $0x420] ss:$16 sps:$4 sm:$0xff]  }
  0x4b   :  { %1485 = vmatpush2.bf16.msra.mxu0 %v5023_v49  ;;  %v5094_v32 = vld [vmem:[#allocation2 + $0x624] ss:$16 sps:$4 sm:$0xff]   ;;  %v5092_v36 = vld [vmem:[#allocation2 + $0x620] ss:$16 sps:$4 sm:$0xff]  }
  0x4c   :  { %1526 = vmatpush2.bf16.msra.mxu1 %v5024_v50  ;;  %1486 = vmatprep.subr.bf16.mxu0 %v5025_v52  ;;  %v5890_v33 = vld [vmem:[%s6192_s0 + $0x10] sm:$0xff]  ;;  %v5111_v50 = vld [vmem:[#allocation2 + $0xc8] ss:$16 sps:$4 sm:$0xff]  }
  0x4d   :  { %1527 = vmatprep.subr.bf16.mxu1 %v5027_v53  ;;  %v5894_v35 = vcombine.high %v5890_v33, %v5890_v33  ;;  %v5097_v37 = vld [vmem:[#allocation2 + $0x404] ss:$16 sps:$4 sm:$0xff]   ;;  %v5095_v39 = vld [vmem:[#allocation2 + $0x400] ss:$16 sps:$4 sm:$0xff]   ;;  %v5119_v53 = vld [vmem:[#allocation2 + $0xac] ss:$16 sps:$4 sm:$0xff]  }
  0x4e   :  { %v5100_v38 = vld [vmem:[#allocation2 + $0x604] ss:$16 sps:$4 sm:$0xff]   ;;  %v5098_v40 = vld [vmem:[#allocation2 + $0x600] ss:$16 sps:$4 sm:$0xff]  }
  0x4f   :  { %1487 = vmatpush2.bf16.msra.mxu0 %v5029_v54  ;;  %v5103_v41 = vld [vmem:[#allocation2 + $0x5e4] ss:$16 sps:$4 sm:$0xff]   ;;  %v5101_v43 = vld [vmem:[#allocation2 + $0x5e0] ss:$16 sps:$4 sm:$0xff]  }
  0x50   :  { %1528 = vmatpush2.bf16.msra.mxu1 %v5030_v55  ;;  %1488 = vmatprep.subr.bf16.mxu0 %v5031_v56  ;;  %v5110_v46 = vld [vmem:[#allocation2 + $0x5c4] ss:$16 sps:$4 sm:$0xff]   ;;  %v5108_v49 = vld [vmem:[#allocation2 + $0x5c0] ss:$16 sps:$4 sm:$0xff]   ;;  %v5117_v55 = vld [vmem:[#allocation2 + $0xa8] ss:$16 sps:$4 sm:$0xff]  }
  0x51   :  { %1529 = vmatprep.subr.bf16.mxu1 %v5033_v57  ;;  %v5116_v52 = vld [vmem:[#allocation2 + $0x5a4] ss:$16 sps:$4 sm:$0xff]   ;;  %v5114_v54 = vld [vmem:[#allocation2 + $0x5a0] ss:$16 sps:$4 sm:$0xff]   ;;  %v5125_v57 = vld [vmem:[#allocation2 + $0x8c] ss:$16 sps:$4 sm:$0xff]  }
  0x52   :  { %v5122_v56 = vld [vmem:[#allocation2 + $0x584] ss:$16 sps:$4 sm:$0xff]  }
  0x53   :  { %1489 = vmatpush2.bf16.msra.mxu0 %v5035_v58  ;;  %v5120_v58 = vld [vmem:[#allocation2 + $0x580] ss:$16 sps:$4 sm:$0xff]  }
  0x54   :  { %1530 = vmatpush2.bf16.msra.mxu1 %v5036_v59  ;;  %1490 = vmatprep.subr.bf16.mxu0 %v5037_v60  ;;  %v5123_v59 = vld [vmem:[#allocation2 + $0x88] ss:$16 sps:$4 sm:$0xff]   ;;  %v5128_v60 = vld [vmem:[#allocation2 + $0x564] ss:$16 sps:$4 sm:$0xff]  }
  0x55   :  { %1531 = vmatprep.subr.bf16.mxu1 %v5039_v61  ;;  %v5131_v61 = vld [vmem:[#allocation2 + $0x6c] ss:$16 sps:$4 sm:$0xff]  }
  0x57   :  { %1491 = vmatpush2.bf16.msra.mxu0 %v5041_v62  ;;  %v5126_v62 = vld [vmem:[#allocation2 + $0x560] ss:$16 sps:$4 sm:$0xff]  }
  0x58   :  { %1532 = vmatpush2.bf16.msra.mxu1 %v5042_v63  ;;  %1492 = vmatprep.subr.bf16.mxu0 %v5043_v0  ;;  %v5134_v63 = vld [vmem:[#allocation2 + $0x544] ss:$16 sps:$4 sm:$0xff]   ;;  %v5137_v0 = vld [vmem:[#allocation2 + $0x4c] ss:$16 sps:$4 sm:$0xff]  }
  0x59   :  { %1533 = vmatprep.subr.bf16.mxu1 %v5045_v1  ;;  %v5132_v1 = vld [vmem:[#allocation2 + $0x540] ss:$16 sps:$4 sm:$0xff]  }
  0x5b   :  { %1493 = vmatpush2.bf16.msra.mxu0 %v5047_v2  ;;  %v5135_v2 = vld [vmem:[#allocation2 + $0x48] ss:$16 sps:$4 sm:$0xff]  }
  0x5c   :  { %1534 = vmatpush2.bf16.msra.mxu1 %v5048_v3  ;;  %1544 = vmatprep.subr.bf16.mxu0 %v5055_v4  ;;  %v5140_v3 = vld [vmem:[#allocation2 + $0x524] ss:$16 sps:$4 sm:$0xff]   ;;  %v5143_v4 = vld [vmem:[#allocation2 + $0x2c] ss:$16 sps:$4 sm:$0xff]  }
  0x5d   :  { %1585 = vmatprep.subr.bf16.mxu1 %v5058_v5  ;;  %v5138_v5 = vld [vmem:[#allocation2 + $0x520] ss:$16 sps:$4 sm:$0xff]  }
  0x5e   :  { %1495 = vmatmul.mubr.bf16.vlgmr.msra.gmra.mxu0 %v5880_v6 }
  0x5f   :  { %1536 = vmatmul.mubr.bf16.vlgmr.msra.gmra.mxu1 %v5882_v7  ;;  %1545 = vmatpush1.bf16.msra.mxu0 %v5053_v8  ;;  %v5141_v8 = vld [vmem:[#allocation2 + $0x28] ss:$16 sps:$4 sm:$0xff]  }
  0x60   :  { %1586 = vmatpush1.bf16.msra.mxu1 %v5056_v9  ;;  %1546 = vmatprep.subr.bf16.mxu0 %v5061_v10  ;;  %v5146_v9 = vld [vmem:[#allocation2 + $0x504] ss:$16 sps:$4 sm:$0xff]   ;;  %v5149_v10 = vld [vmem:[#allocation2 + $0xc] ss:$16 sps:$4 sm:$0xff]  }
  0x61   :  { %1587 = vmatprep.subr.bf16.mxu1 %v5064_v11  ;;  %1617 = vmatprep.mubr.bf16.mxu1 %v5799_v16  ;;  %v5144_v11 = vld [vmem:[#allocation2 + $0x500] ss:$16 sps:$4 sm:$0xff]  }
  0x62   :  { %1576 = vmatprep.mubr.bf16.mxu0 %v5894_v35 }
  0x63   :  { %1547 = vmatpush1.bf16.msra.mxu0 %v5059_v12  ;;  %v5147_v12 = vld [vmem:[#allocation2 + $0x8] ss:$16 sps:$4 sm:$0xff]  }
  0x64   :  { %1588 = vmatpush1.bf16.msra.mxu1 %v5062_v13  ;;  %1548 = vmatprep.subr.bf16.mxu0 %v5067_v14  ;;  %v5154_v13 = vld [vmem:[#allocation2 + $0x1ec] ss:$16 sps:$4 sm:$0xff]  }
  0x65   :  { %1589 = vmatprep.subr.bf16.mxu1 %v5070_v15  ;;  %v5157_v14 = vld [vmem:[#allocation2 + $0x2ec] ss:$16 sps:$4 sm:$0xff]   ;;  %v5903_v15 = vcombine.low %v5890_v33, %v5890_v33  ;;  %v5176_v33 = vld [vmem:[#allocation2 + $0x168] ss:$16 sps:$4 sm:$0xff]  }
  0x67   :  { %1549 = vmatpush1.bf16.msra.mxu0 %v5065_v17  ;;  %v5152_v17 = vld [vmem:[#allocation2 + $0x1e8] ss:$16 sps:$4 sm:$0xff]  }
  0x68   :  { %1590 = vmatpush1.bf16.msra.mxu1 %v5068_v18  ;;  %1550 = vmatprep.subr.bf16.mxu0 %v5073_v19  ;;  %v5155_v18 = vld [vmem:[#allocation2 + $0x2e8] ss:$16 sps:$4 sm:$0xff]   ;;  %v5160_v19 = vld [vmem:[#allocation2 + $0x1cc] ss:$16 sps:$4 sm:$0xff]  }
  0x69   :  { %1591 = vmatprep.subr.bf16.mxu1 %v5076_v20  ;;  %v5163_v20 = vld [vmem:[#allocation2 + $0x2cc] ss:$16 sps:$4 sm:$0xff]  }
  0x6b   :  { %1551 = vmatpush1.bf16.msra.mxu0 %v5071_v21  ;;  %v5158_v21 = vld [vmem:[#allocation2 + $0x1c8] ss:$16 sps:$4 sm:$0xff]  }
  0x6c   :  { %1592 = vmatpush1.bf16.msra.mxu1 %v5074_v22  ;;  %1552 = vmatprep.subr.bf16.mxu0 %v5079_v23  ;;  %v5161_v22 = vld [vmem:[#allocation2 + $0x2c8] ss:$16 sps:$4 sm:$0xff]   ;;  %v5166_v23 = vld [vmem:[#allocation2 + $0x1ac] ss:$16 sps:$4 sm:$0xff]  }
  0x6d   :  { %1593 = vmatprep.subr.bf16.mxu1 %v5082_v24  ;;  %v5169_v24 = vld [vmem:[#allocation2 + $0x2ac] ss:$16 sps:$4 sm:$0xff]  }
  0x6f   :  { %1553 = vmatpush1.bf16.msra.mxu0 %v5077_v25  ;;  %v5164_v25 = vld [vmem:[#allocation2 + $0x1a8] ss:$16 sps:$4 sm:$0xff]  }
  0x70   :  { %1594 = vmatpush1.bf16.msra.mxu1 %v5080_v26  ;;  %1554 = vmatprep.subr.bf16.mxu0 %v5085_v27  ;;  %v5167_v26 = vld [vmem:[#allocation2 + $0x2a8] ss:$16 sps:$4 sm:$0xff]   ;;  %v5172_v27 = vld [vmem:[#allocation2 + $0x18c] ss:$16 sps:$4 sm:$0xff]  }
  0x71   :  { %1595 = vmatprep.subr.bf16.mxu1 %v5088_v28  ;;  %v5175_v28 = vld [vmem:[#allocation2 + $0x28c] ss:$16 sps:$4 sm:$0xff]  }
  0x73   :  { %1555 = vmatpush1.bf16.msra.mxu0 %v5083_v29  ;;  %v5170_v29 = vld [vmem:[#allocation2 + $0x188] ss:$16 sps:$4 sm:$0xff]  }
  0x74   :  { %1596 = vmatpush1.bf16.msra.mxu1 %v5086_v30  ;;  %1556 = vmatprep.subr.bf16.mxu0 %v5091_v31  ;;  %v5173_v30 = vld [vmem:[#allocation2 + $0x288] ss:$16 sps:$4 sm:$0xff]   ;;  %v5178_v31 = vld [vmem:[#allocation2 + $0x16c] ss:$16 sps:$4 sm:$0xff]  }
  0x75   :  { %1597 = vmatprep.subr.bf16.mxu1 %v5094_v32  ;;  %v5181_v32 = vld [vmem:[#allocation2 + $0x26c] ss:$16 sps:$4 sm:$0xff]  }
  0x77   :  { %1557 = vmatpush1.bf16.msra.mxu0 %v5089_v34  ;;  %v5184_v34 = vld [vmem:[#allocation2 + $0x14c] ss:$16 sps:$4 sm:$0xff]  }
  0x78   :  { %1598 = vmatpush1.bf16.msra.mxu1 %v5092_v36  ;;  %1558 = vmatprep.subr.bf16.mxu0 %v5097_v37  ;;  %v5187_v36 = vld [vmem:[#allocation2 + $0x24c] ss:$16 sps:$4 sm:$0xff]   ;;  %v5182_v37 = vld [vmem:[#allocation2 + $0x148] ss:$16 sps:$4 sm:$0xff]  }
  0x79   :  { %1599 = vmatprep.subr.bf16.mxu1 %v5100_v38  ;;  %v5185_v38 = vld [vmem:[#allocation2 + $0x248] ss:$16 sps:$4 sm:$0xff]  }
  0x7b   :  { %1559 = vmatpush1.bf16.msra.mxu0 %v5095_v39  ;;  %v5190_v39 = vld [vmem:[#allocation2 + $0x12c] ss:$16 sps:$4 sm:$0xff]  }
  0x7c   :  { %1600 = vmatpush1.bf16.msra.mxu1 %v5098_v40  ;;  %1560 = vmatprep.subr.bf16.mxu0 %v5103_v41  ;;  %v5193_v40 = vld [vmem:[#allocation2 + $0x22c] ss:$16 sps:$4 sm:$0xff]   ;;  %v5188_v41 = vld [vmem:[#allocation2 + $0x128] ss:$16 sps:$4 sm:$0xff]  }
  0x7d   :  { %1626 = vmatprep.subr.bf16.mxu1 %v5107_v42  ;;  %v5191_v42 = vld [vmem:[#allocation2 + $0x228] ss:$16 sps:$4 sm:$0xff]  }
  0x7f   :  { %1618 = vmatmul.mubr.bf16.vlgmr.msra.gmra.mxu1 %v5104_v44  ;;  %1561 = vmatpush2.bf16.msra.mxu0 %v5101_v43  ;;  %v5196_v43 = vld [vmem:[#allocation2 + $0x10c] ss:$16 sps:$4 sm:$0xff]  }
  0x80   :  { %1627 = vmatpush1.bf16.msra.mxu1 %v5105_v45  ;;  %1562 = vmatprep.subr.bf16.mxu0 %v5110_v46  ;;  %v5199_v44 = vld [vmem:[#allocation2 + $0x20c] ss:$16 sps:$4 sm:$0xff]   ;;  %v5194_v45 = vld [vmem:[#allocation2 + $0x108] ss:$16 sps:$4 sm:$0xff]  }
  0x81   :  { %1628 = vmatprep.subr.bf16.mxu1 %v5113_v48  ;;  %1658 = vmatprep.mubr.bf16.mxu1 %v5871_v47  ;;  %v5129_v47 = vld [vmem:[#allocation2 + $0x68] ss:$16 sps:$4 sm:$0xff]   ;;  %v5202_v48 = vld [vmem:[#allocation2 + $0x3ec] ss:$16 sps:$4 sm:$0xff]  }
  0x82   :  { %v5197_v46 = vld [vmem:[#allocation2 + $0x208] ss:$16 sps:$4 sm:$0xff]  }
  0x83   :  { %1563 = vmatpush2.bf16.msra.mxu0 %v5108_v49  ;;  %v5205_v49 = vld [vmem:[#allocation2 + $0x4ec] ss:$16 sps:$4 sm:$0xff]  }
  0x84   :  { %1629 = vmatpush1.bf16.msra.mxu1 %v5111_v50  ;;  %1564 = vmatprep.subr.bf16.mxu0 %v5116_v52  ;;  %v5200_v50 = vld [vmem:[#allocation2 + $0x3e8] ss:$16 sps:$4 sm:$0xff]  }
  0x85   :  { %1630 = vmatprep.subr.bf16.mxu1 %v5119_v53  ;;  %v5203_v52 = vld [vmem:[#allocation2 + $0x4e8] ss:$16 sps:$4 sm:$0xff]   ;;  %v5208_v53 = vld [vmem:[#allocation2 + $0x3cc] ss:$16 sps:$4 sm:$0xff]  }
  0x87   :  { %1565 = vmatpush2.bf16.msra.mxu0 %v5114_v54  ;;  %v5211_v54 = vld [vmem:[#allocation2 + $0x4cc] ss:$16 sps:$4 sm:$0xff]  }
  0x88   :  { %1631 = vmatpush1.bf16.msra.mxu1 %v5117_v55  ;;  %1566 = vmatprep.subr.bf16.mxu0 %v5122_v56  ;;  %v5206_v55 = vld [vmem:[#allocation2 + $0x3c8] ss:$16 sps:$4 sm:$0xff]  }
  0x89   :  { %1632 = vmatprep.subr.bf16.mxu1 %v5125_v57  ;;  %v5209_v56 = vld [vmem:[#allocation2 + $0x4c8] ss:$16 sps:$4 sm:$0xff]   ;;  %v5214_v57 = vld [vmem:[#allocation2 + $0x3ac] ss:$16 sps:$4 sm:$0xff]  }
  0x8b   :  { %1567 = vmatpush2.bf16.msra.mxu0 %v5120_v58  ;;  %v5217_v58 = vld [vmem:[#allocation2 + $0x4ac] ss:$16 sps:$4 sm:$0xff]  }
  0x8c   :  { %1633 = vmatpush1.bf16.msra.mxu1 %v5123_v59  ;;  %1568 = vmatprep.subr.bf16.mxu0 %v5128_v60  ;;  %v5212_v59 = vld [vmem:[#allocation2 + $0x3a8] ss:$16 sps:$4 sm:$0xff]  }
  0x8d   :  { %1634 = vmatprep.subr.bf16.mxu1 %v5131_v61  ;;  %v5215_v60 = vld [vmem:[#allocation2 + $0x4a8] ss:$16 sps:$4 sm:$0xff]   ;;  %v5220_v61 = vld [vmem:[#allocation2 + $0x38c] ss:$16 sps:$4 sm:$0xff]  }
  0x8f   :  { %1569 = vmatpush2.bf16.msra.mxu0 %v5126_v62  ;;  %v5223_v62 = vld [vmem:[#allocation2 + $0x48c] ss:$16 sps:$4 sm:$0xff]  }
  0x90   :  { %1635 = vmatpush1.bf16.msra.mxu1 %v5129_v47  ;;  %1570 = vmatprep.subr.bf16.mxu0 %v5134_v63  ;;  %v5218_v47 = vld [vmem:[#allocation2 + $0x388] ss:$16 sps:$4 sm:$0xff]  }
  0x91   :  { %1636 = vmatprep.subr.bf16.mxu1 %v5137_v0  ;;  %v5221_v63 = vld [vmem:[#allocation2 + $0x488] ss:$16 sps:$4 sm:$0xff]   ;;  %v5226_v0 = vld [vmem:[#allocation2 + $0x36c] ss:$16 sps:$4 sm:$0xff]  }
  0x93   :  { %1571 = vmatpush2.bf16.msra.mxu0 %v5132_v1  ;;  %v5224_v1 = vld [vmem:[#allocation2 + $0x368] ss:$16 sps:$4 sm:$0xff]  }
  0x94   :  { %1637 = vmatpush1.bf16.msra.mxu1 %v5135_v2  ;;  %1572 = vmatprep.subr.bf16.mxu0 %v5140_v3  ;;  %v5227_v2 = vld [vmem:[#allocation2 + $0x468] ss:$16 sps:$4 sm:$0xff]   ;;  %v5232_v3 = vld [vmem:[#allocation2 + $0x34c] ss:$16 sps:$4 sm:$0xff]  }
  0x95   :  { %1638 = vmatprep.subr.bf16.mxu1 %v5143_v4  ;;  %v5235_v4 = vld [vmem:[#allocation2 + $0x44c] ss:$16 sps:$4 sm:$0xff]  }
  0x97   :  { %1573 = vmatpush2.bf16.msra.mxu0 %v5138_v5  ;;  %v5233_v5 = vld [vmem:[#allocation2 + $0x448] ss:$16 sps:$4 sm:$0xff]  }
  0x98   :  { %1639 = vmatpush1.bf16.msra.mxu1 %v5141_v8  ;;  %1574 = vmatprep.subr.bf16.mxu0 %v5146_v9  ;;  %v5238_v8 = vld [vmem:[#allocation2 + $0x32c] ss:$16 sps:$4 sm:$0xff]  }
  0x99   :  { %1640 = vmatprep.subr.bf16.mxu1 %v5149_v10  ;;  %v5241_v9 = vld [vmem:[#allocation2 + $0x42c] ss:$16 sps:$4 sm:$0xff]   ;;  %v5236_v10 = vld [vmem:[#allocation2 + $0x328] ss:$16 sps:$4 sm:$0xff]  }
  0x9b   :  { %1575 = vmatpush2.bf16.msra.mxu0 %v5144_v11  ;;  %v5239_v11 = vld [vmem:[#allocation2 + $0x428] ss:$16 sps:$4 sm:$0xff]  }
  0x9c   :  { %1641 = vmatpush1.bf16.msra.mxu1 %v5147_v12  ;;  %1667 = vmatprep.subr.bf16.mxu0 %v5157_v14  ;;  %v5244_v12 = vld [vmem:[#allocation2 + $0x30c] ss:$16 sps:$4 sm:$0xff]   ;;  %v5242_v14 = vld [vmem:[#allocation2 + $0x308] ss:$16 sps:$4 sm:$0xff]  }
  0x9d   :  { %1642 = vmatprep.subr.bf16.mxu1 %v5154_v13  ;;  %v5247_v13 = vld [vmem:[#allocation2 + $0x40c] ss:$16 sps:$4 sm:$0xff]  }
  0x9e   :  { %1577 = vmatmul.mubr.bf16.vlgmr.msra.gmra.mxu0 %v5903_v15 }
  0x9f   :  { %1668 = vmatpush1.bf16.msra.mxu0 %v5155_v18  ;;  %1699 = vmatprep.mubr.bf16.mxu0 %v5876_v51  ;;  %v5179_v51 = vld [vmem:[#allocation2 + $0x268] ss:$16 sps:$4 sm:$0xff]   ;;  %v5250_v18 = vld [vmem:[#allocation2 + $0x5ec] ss:$16 sps:$4 sm:$0xff]  }
  0xa0   :  { %1643 = vmatpush2.bf16.msra.mxu1 %v5152_v17  ;;  %1669 = vmatprep.subr.bf16.mxu0 %v5163_v20  ;;  %v5245_v17 = vld [vmem:[#allocation2 + $0x408] ss:$16 sps:$4 sm:$0xff]  }
  0xa1   :  { %1644 = vmatprep.subr.bf16.mxu1 %v5160_v19  ;;  %v5253_v19 = vld [vmem:[#allocation2 + $0x6ec] ss:$16 sps:$4 sm:$0xff]   ;;  %v5248_v20 = vld [vmem:[#allocation2 + $0x5e8] ss:$16 sps:$4 sm:$0xff]  }
  0xa3   :  { %1670 = vmatpush1.bf16.msra.mxu0 %v5161_v22  ;;  %v5256_v22 = vld [vmem:[#allocation2 + $0x5cc] ss:$16 sps:$4 sm:$0xff]  }
  0xa4   :  { %1645 = vmatpush2.bf16.msra.mxu1 %v5158_v21  ;;  %1671 = vmatprep.subr.bf16.mxu0 %v5169_v24  ;;  %v5251_v21 = vld [vmem:[#allocation2 + $0x6e8] ss:$16 sps:$4 sm:$0xff]  }
  0xa5   :  { %1646 = vmatprep.subr.bf16.mxu1 %v5166_v23  ;;  %v5259_v23 = vld [vmem:[#allocation2 + $0x6cc] ss:$16 sps:$4 sm:$0xff]   ;;  %v5254_v24 = vld [vmem:[#allocation2 + $0x5c8] ss:$16 sps:$4 sm:$0xff]  }
  0xa7   :  { %1672 = vmatpush1.bf16.msra.mxu0 %v5167_v26  ;;  %v5262_v26 = vld [vmem:[#allocation2 + $0x5ac] ss:$16 sps:$4 sm:$0xff]  }
  0xa8   :  { %1647 = vmatpush2.bf16.msra.mxu1 %v5164_v25  ;;  %1673 = vmatprep.subr.bf16.mxu0 %v5175_v28  ;;  %v5257_v25 = vld [vmem:[#allocation2 + $0x6c8] ss:$16 sps:$4 sm:$0xff]  }
  0xa9   :  { %1648 = vmatprep.subr.bf16.mxu1 %v5172_v27  ;;  %v5265_v27 = vld [vmem:[#allocation2 + $0x6ac] ss:$16 sps:$4 sm:$0xff]   ;;  %v5260_v28 = vld [vmem:[#allocation2 + $0x5a8] ss:$16 sps:$4 sm:$0xff]  }
  0xab   :  { %1674 = vmatpush1.bf16.msra.mxu0 %v5173_v30  ;;  %v5268_v30 = vld [vmem:[#allocation2 + $0x58c] ss:$16 sps:$4 sm:$0xff]  }
  0xac   :  { %1649 = vmatpush2.bf16.msra.mxu1 %v5170_v29  ;;  %1675 = vmatprep.subr.bf16.mxu0 %v5181_v32  ;;  %v5263_v29 = vld [vmem:[#allocation2 + $0x6a8] ss:$16 sps:$4 sm:$0xff]  }
  0xad   :  { %1650 = vmatprep.subr.bf16.mxu1 %v5178_v31  ;;  %v5271_v31 = vld [vmem:[#allocation2 + $0x68c] ss:$16 sps:$4 sm:$0xff]   ;;  %v5266_v32 = vld [vmem:[#allocation2 + $0x588] ss:$16 sps:$4 sm:$0xff]  }
  0xaf   :  { %1676 = vmatpush1.bf16.msra.mxu0 %v5179_v51  ;;  %v5274_v51 = vld [vmem:[#allocation2 + $0x56c] ss:$16 sps:$4 sm:$0xff]  }
  0xb0   :  { %1651 = vmatpush2.bf16.msra.mxu1 %v5176_v33  ;;  %1677 = vmatprep.subr.bf16.mxu0 %v5187_v36  ;;  %v5269_v33 = vld [vmem:[#allocation2 + $0x688] ss:$16 sps:$4 sm:$0xff]  }
  0xb1   :  { %1652 = vmatprep.subr.bf16.mxu1 %v5184_v34  ;;  %v5272_v34 = vld [vmem:[#allocation2 + $0x568] ss:$16 sps:$4 sm:$0xff]  }
  0xb2   :  { %v5275_v36 = vld [vmem:[#allocation2 + $0x668] ss:$16 sps:$4 sm:$0xff]  }
  0xb3   :  { %1678 = vmatpush1.bf16.msra.mxu0 %v5185_v38  ;;  %v5283_v38 = vld [vmem:[#allocation2 + $0x64c] ss:$16 sps:$4 sm:$0xff]  }
  0xb4   :  { %1653 = vmatpush2.bf16.msra.mxu1 %v5182_v37  ;;  %1679 = vmatprep.subr.bf16.mxu0 %v5193_v40  ;;  %v5280_v37 = vld [vmem:[#allocation2 + $0x54c] ss:$16 sps:$4 sm:$0xff]   ;;  %v5281_v40 = vld [vmem:[#allocation2 + $0x648] ss:$16 sps:$4 sm:$0xff]  }
  0xb5   :  { %1654 = vmatprep.subr.bf16.mxu1 %v5190_v39  ;;  %v5278_v39 = vld [vmem:[#allocation2 + $0x548] ss:$16 sps:$4 sm:$0xff]  }
  0xb7   :  { %1680 = vmatpush1.bf16.msra.mxu0 %v5191_v42  ;;  %v5289_v42 = vld [vmem:[#allocation2 + $0x62c] ss:$16 sps:$4 sm:$0xff]  }
  0xb8   :  { %1655 = vmatpush2.bf16.msra.mxu1 %v5188_v41  ;;  %1681 = vmatprep.subr.bf16.mxu0 %v5199_v44  ;;  %v5286_v41 = vld [vmem:[#allocation2 + $0x52c] ss:$16 sps:$4 sm:$0xff]   ;;  %v5287_v44 = vld [vmem:[#allocation2 + $0x628] ss:$16 sps:$4 sm:$0xff]  }
  0xb9   :  { %1656 = vmatprep.subr.bf16.mxu1 %v5196_v43  ;;  %v5284_v43 = vld [vmem:[#allocation2 + $0x528] ss:$16 sps:$4 sm:$0xff]  }
  0xbb   :  { %1682 = vmatpush1.bf16.msra.mxu0 %v5197_v46  ;;  %v5295_v46 = vld [vmem:[#allocation2 + $0x60c] ss:$16 sps:$4 sm:$0xff]  }
  0xbc   :  { %1657 = vmatpush2.bf16.msra.mxu1 %v5194_v45  ;;  %1683 = vmatprep.subr.bf16.mxu0 %v5202_v48  ;;  %v5292_v45 = vld [vmem:[#allocation2 + $0x50c] ss:$16 sps:$4 sm:$0xff]   ;;  %v5290_v48 = vld [vmem:[#allocation2 + $0x508] ss:$16 sps:$4 sm:$0xff]  }
  0xbd   :  { %1708 = vmatprep.subr.bf16.mxu1 %v5205_v49  ;;  %v5293_v49 = vld [vmem:[#allocation2 + $0x608] ss:$16 sps:$4 sm:$0xff]  }
  0xbf   :  { %1659 = vmatmul.mubr.bf16.vlgmr.msra.gmra.mxu1 %v5880_v6  ;;  %1684 = vmatpush2.bf16.msra.mxu0 %v5200_v50  ;;  %v5229_v6 = vld [vmem:[#allocation2 + $0x46c] ss:$16 sps:$4 sm:$0xff]  }
  0xc0   :  { %1709 = vmatpush1.bf16.msra.mxu1 %v5203_v52  ;;  %1685 = vmatprep.subr.bf16.mxu0 %v5208_v53  ;;  %v5296_v50 = vld [vmem:[%s6196_s4 + $0x78] sm:$0xff]   ;;  %v5298_v53 = vld [vmem:[%s6196_s4 + $0x70] sm:$0xff]  }
  0xc1   :  { %1710 = vmatprep.subr.bf16.mxu1 %v5211_v54  ;;  %1740 = vmatprep.mubr.bf16.mxu1 %v5894_v35  ;;  %v5230_v35 = vld [vmem:[#allocation2 + $0x348] ss:$16 sps:$4 sm:$0xff]   ;;  %v5299_v54 = vld [vmem:[%s6196_s4 + $0x30] sm:$0xff]  }
  0xc2   :  { %v5297_v52 = vld [vmem:[%s6196_s4 + $0x38] sm:$0xff]  }
  0xc3   :  { %1686 = vmatpush2.bf16.msra.mxu0 %v5206_v55  ;;  %v5726_v55 = vld [vmem:[%s6192_s0 + $0x18] ss:$0 sps:$4 sm:$0xff]  }
  0xc4   :  { %1711 = vmatpush1.bf16.msra.mxu1 %v5209_v56  ;;  %1687 = vmatprep.subr.bf16.mxu0 %v5214_v57  ;;  %v5300_v56 = vld [vmem:[%s6196_s4 + $0x68] sm:$0xff]  }
  0xc5   :  { %1712 = vmatprep.subr.bf16.mxu1 %v5217_v58  ;;  %v5301_v57 = vld [vmem:[%s6196_s4 + $0x28] sm:$0xff]   ;;  %v5302_v58 = vld [vmem:[%s6196_s4 + $0x60] sm:$0xff]  }
  0xc7   :  { %1688 = vmatpush2.bf16.msra.mxu0 %v5212_v59  ;;  %v5304_v59 = vld [vmem:[%s6196_s4 + $0x58] sm:$0xff]  }
  0xc8   :  { %1713 = vmatpush1.bf16.msra.mxu1 %v5215_v60  ;;  %1689 = vmatprep.subr.bf16.mxu0 %v5220_v61  ;;  %v5305_v60 = vld [vmem:[%s6196_s4 + $0x18] sm:$0xff]   ;;  %v5306_v61 = vld [vmem:[%s6196_s4 + $0x50] sm:$0xff]  }
  0xc9   :  { %1714 = vmatprep.subr.bf16.mxu1 %v5223_v62  ;;  %v5307_v62 = vld [vmem:[%s6196_s4 + $0x10] sm:$0xff]  }
  0xcb   :  { %1690 = vmatpush2.bf16.msra.mxu0 %v5218_v47  ;;  %v5308_v47 = vld [vmem:[%s6196_s4 + $0x48] sm:$0xff]  }
  0xcc   :  { %1715 = vmatpush1.bf16.msra.mxu1 %v5221_v63  ;;  %1691 = vmatprep.subr.bf16.mxu0 %v5226_v0  ;;  %v5309_v63 = vld [vmem:[%s6196_s4 + $0x8] sm:$0xff]   ;;  %v5310_v0 = vld [vmem:[%s6196_s4 + $0x40] sm:$0xff]  }
  0xcd   :  { %1716 = vmatprep.subr.bf16.mxu1 %v5229_v6  ;;  %v5311_v6 = vld [vmem:[%s6196_s4] sm:$0xff]  }
  0xcf   :  { %1692 = vmatpush2.bf16.msra.mxu0 %v5224_v1 }
  0xd0   :  { %1717 = vmatpush1.bf16.msra.mxu1 %v5227_v2  ;;  %1693 = vmatprep.subr.bf16.mxu0 %v5232_v3 }
  0xd1   :  { %1718 = vmatprep.subr.bf16.mxu1 %v5235_v4 }
  0xd3   :  { %1694 = vmatpush2.bf16.msra.mxu0 %v5230_v35 }
  0xd4   :  { %1719 = vmatpush1.bf16.msra.mxu1 %v5233_v5  ;;  %1695 = vmatprep.subr.bf16.mxu0 %v5238_v8 }
  0xd5   :  { %1720 = vmatprep.subr.bf16.mxu1 %v5241_v9 }
  0xd7   :  { %1696 = vmatpush2.bf16.msra.mxu0 %v5236_v10  ;;  %v5312_v10 = vld [vmem:[%s6196_s4 + $0xf8] sm:$0xff]  }
  0xd8   :  { %1721 = vmatpush1.bf16.msra.mxu1 %v5239_v11  ;;  %1697 = vmatprep.subr.bf16.mxu0 %v5244_v12  ;;  %v5313_v11 = vld [vmem:[%s6196_s4 + $0xb8] sm:$0xff]   ;;  %v5314_v12 = vld [vmem:[%s6196_s4 + $0xf0] sm:$0xff]  }
  0xd9   :  { %1722 = vmatprep.subr.bf16.mxu1 %v5247_v13  ;;  %v5315_v13 = vld [vmem:[%s6196_s4 + $0xb0] sm:$0xff]  }
  0xdb   :  { %1698 = vmatpush2.bf16.msra.mxu0 %v5242_v14  ;;  %v5316_v14 = vld [vmem:[%s6196_s4 + $0xe8] sm:$0xff]  }
  0xdc   :  { %1723 = vmatpush1.bf16.msra.mxu1 %v5245_v17  ;;  %1749 = vmatprep.subr.bf16.mxu0 %v5253_v19  ;;  %v5317_v17 = vld [vmem:[%s6196_s4 + $0xa8] sm:$0xff]   ;;  %v5319_v19 = vld [vmem:[%s6196_s4 + $0xa0] sm:$0xff]  }
  0xdd   :  { %1724 = vmatprep.subr.bf16.mxu1 %v5250_v18  ;;  %v5318_v18 = vld [vmem:[%s6196_s4 + $0xe0] sm:$0xff]  }
  0xde   :  { %1700 = vmatmul.mubr.bf16.vlgmr.msra.gmra.mxu0 %v5882_v7  ;;  %v5277_v7 = vld [vmem:[#allocation2 + $0x66c] ss:$16 sps:$4 sm:$0xff]  }
  0xdf   :  { %1750 = vmatpush1.bf16.msra.mxu0 %v5251_v21  ;;  %1781 = vmatprep.mubr.bf16.mxu0 %v5799_v16  ;;  %v5321_v21 = vld [vmem:[%s6196_s4 + $0x98] sm:$0xff]  }
  0xe0   :  { %1725 = vmatpush2.bf16.msra.mxu1 %v5248_v20  ;;  %1751 = vmatprep.subr.bf16.mxu0 %v5259_v23  ;;  %v5320_v20 = vld [vmem:[%s6196_s4 + $0xd8] sm:$0xff]   ;;  %v5323_v23 = vld [vmem:[%s6196_s4 + $0x90] sm:$0xff]  }
  0xe1   :  { %1726 = vmatprep.subr.bf16.mxu1 %v5256_v22  ;;  %v5322_v22 = vld [vmem:[%s6196_s4 + $0xd0] sm:$0xff]  }
  0xe3   :  { %1752 = vmatpush1.bf16.msra.mxu0 %v5257_v25 }
  0xe4   :  { %1727 = vmatpush2.bf16.msra.mxu1 %v5254_v24  ;;  %1753 = vmatprep.subr.bf16.mxu0 %v5265_v27  ;;  %v5325_v27 = vld [vmem:[%s6196_s4 + $0x88] sm:$0xff]  }
  0xe5   :  { %1728 = vmatprep.subr.bf16.mxu1 %v5262_v26  ;;  %v5324_v26 = vld [vmem:[%s6196_s4 + $0xc8] sm:$0xff]  }
  0xe7   :  { %1754 = vmatpush1.bf16.msra.mxu0 %v5263_v29 }
  0xe8   :  { %1729 = vmatpush2.bf16.msra.mxu1 %v5260_v28  ;;  %1755 = vmatprep.subr.bf16.mxu0 %v5271_v31  ;;  %v5327_v31 = vld [vmem:[%s6196_s4 + $0x80] sm:$0xff]  }
  0xe9   :  { %1730 = vmatprep.subr.bf16.mxu1 %v5268_v30  ;;  %v5326_v30 = vld [vmem:[%s6196_s4 + $0xc0] sm:$0xff]  }
  0xeb   :  { %1756 = vmatpush1.bf16.msra.mxu0 %v5269_v33 }
  0xec   :  { %1731 = vmatpush2.bf16.msra.mxu1 %v5266_v32  ;;  %1757 = vmatprep.subr.bf16.mxu0 %v5277_v7  ;;  %v297_v32 = vlaneseq  ;;  %v295_v7 = vld [vmem:[%s6195_s3] sm:$0xf] }
  0xed   :  { %1732 = vmatprep.subr.bf16.mxu1 %v5274_v51 }
  0xee   :  { %v6011_v33 = vshrl.u32 %v297_v32, 7 }
  0xef   :  { %1758 = vmatpush1.bf16.msra.mxu0 %v5275_v36 }
  0xf0   :  { %1733 = vmatpush2.bf16.msra.mxu1 %v5272_v34  ;;  %1759 = vmatprep.subr.bf16.mxu0 %v5283_v38  ;;  %v6014_v51 = vsub.s32 0, %v6011_v33  ;;  %v6020_v34 = vsub.s32 1, %v6011_v33 }
  0xf1   :  { %1734 = vmatprep.subr.bf16.mxu1 %v5280_v37 }
  0xf2   :  { %v300_v36 = vrot.slane %v295_v7, %v6014_v51  ;;  %v304_v37 = vrot.slane %v295_v7, %v6020_v34 }
  0xf3   :  { %1760 = vmatpush1.bf16.msra.mxu0 %v5281_v40 }
  0xf4   :  { %1735 = vmatpush2.bf16.msra.mxu1 %v5278_v39  ;;  %1761 = vmatprep.subr.bf16.mxu0 %v5289_v42 }
  0xf5   :  { %1736 = vmatprep.subr.bf16.mxu1 %v5286_v41 }
  0xf7   :  { %1762 = vmatpush1.bf16.msra.mxu0 %v5287_v44 }
  0xf8   :  { %1737 = vmatpush2.bf16.msra.mxu1 %v5284_v43  ;;  %1763 = vmatprep.subr.bf16.mxu0 %v5295_v46 }
  0xf9   :  { %1738 = vmatprep.subr.bf16.mxu1 %v5292_v45 }
  0xfb   :  { %1764 = vmatpush1.bf16.msra.mxu0 %v5293_v49 }
  0xfc   :  { %1739 = vmatpush2.bf16.msra.mxu1 %v5290_v48  ;;  %4856 = vmatprep.subr.bf16.mxu0 %v5296_v50 }
  0xfd   :  { %4878 = vmatprep.subr.bf16.mxu1 %v5312_v10 }
  0xfe   :  { %1782 = vmatmul.mubr.bf16.vlgmr.msra.gmra.mxu0 %v5726_v55 }
  0xff   :  { %1741 = vmatmul.mubr.bf16.vlgmr.msra.gmra.mxu1 %v5903_v15  ;;  %4857 = vmatpush3.bf16.msra.mxu0 %v5297_v52  ;;  %v5303_v15 = vld [vmem:[%s6196_s4 + $0x20] sm:$0xff]  }
 0x100   :  { %4858 = vmatprep.subr.bf16.mxu0 %v5298_v53  ;;  %4879 = vmatpush3.bf16.msra.mxu1 %v5313_v11 }
 0x101   :  { %4880 = vmatprep.subr.bf16.mxu1 %v5314_v12 }
 0x103   :  { %4859 = vmatpush3.bf16.msra.mxu0 %v5299_v54 }
 0x104   :  { %4860 = vmatprep.subr.bf16.mxu0 %v5300_v56  ;;  %4881 = vmatpush3.bf16.msra.mxu1 %v5315_v13 }
 0x105   :  { %4882 = vmatprep.subr.bf16.mxu1 %v5316_v14 }
 0x107   :  { %4861 = vmatpush3.bf16.msra.mxu0 %v5301_v57 }
 0x108   :  { %4862 = vmatprep.subr.bf16.mxu0 %v5302_v58  ;;  %4883 = vmatpush3.bf16.msra.mxu1 %v5317_v17 }
 0x109   :  { %4884 = vmatprep.subr.bf16.mxu1 %v5318_v18 }
 0x10b   :  { %4863 = vmatpush3.bf16.msra.mxu0 %v5303_v15 }
 0x10c   :  { %4864 = vmatprep.subr.bf16.mxu0 %v5304_v59  ;;  %4885 = vmatpush3.bf16.msra.mxu1 %v5319_v19 }
 0x10d   :  { %4886 = vmatprep.subr.bf16.mxu1 %v5320_v20 }
 0x10f   :  { %4865 = vmatpush3.bf16.msra.mxu0 %v5305_v60 }
 0x110   :  { %4866 = vmatprep.subr.bf16.mxu0 %v5306_v61  ;;  %4887 = vmatpush3.bf16.msra.mxu1 %v5321_v21 }
 0x111   :  { %4888 = vmatprep.subr.bf16.mxu1 %v5322_v22 }
 0x113   :  { %4867 = vmatpush3.bf16.msra.mxu0 %v5307_v62 }
 0x114   :  { %4868 = vmatprep.subr.bf16.mxu0 %v5308_v47  ;;  %4889 = vmatpush3.bf16.msra.mxu1 %v5323_v23  ;;  %v6026_v47 = vsub.s32 2, %v6011_v33 }
 0x115   :  { %4890 = vmatprep.subr.bf16.mxu1 %v5324_v26  ;;  %v5331_v26 = vld [vmem:[%s6198_s6 + $0xe8] ss:$16 sps:$4 sm:$0xff]  }
 0x117   :  { %4869 = vmatpush3.bf16.msra.mxu0 %v5309_v63  ;;  %v6029_v63 = vsub.s32 3, %v6011_v33 }
 0x118   :  { %4870 = vmatprep.subr.bf16.mxu0 %v5310_v0  ;;  %4891 = vmatpush3.bf16.msra.mxu1 %v5325_v27  ;;  %v308_v0 = vrot.slane %v295_v7, %v6026_v47  ;;  %v5333_v27 = vld [vmem:[%s6198_s6 + $0xec] ss:$16 sps:$4 sm:$0xff]  }
 0x119   :  { %4892 = vmatprep.subr.bf16.mxu1 %v5326_v30  ;;  %v5337_v30 = vld [vmem:[%s6198_s6 + $0xc8] ss:$16 sps:$4 sm:$0xff]  }
 0x11b   :  { %4871 = vmatpush3.bf16.msra.mxu0 %v5311_v6  ;;  %v312_v6 = vrot.slane %v295_v7, %v6029_v63 }
 0x11c   :  { %4893 = vmatpush3.bf16.msra.mxu1 %v5327_v31 }
 0x11d   :  { %2406 = vmatprep.subr.bf16.mxu1 %v5333_v27  ;;  %v5393_v27 = vld [vmem:[#allocation5 + $0x49c] ss:$28 sps:$4 sm:$0xff]  }
 0x11e   :  { %v1496_v1 = vpop.f32.mrf.mxu0 }
 0x11f   :  { %v1537_v2 = vpop.f32.mrf.mxu1  ;;  %v1497_v38 = vadd.f32 %v1496_v1, %v300_v36 }
 0x120   :  { %v1498_v3 = vpop.f32.mrf.mxu0 }
 0x121   :  { %v1539_v4 = vpop.f32.mrf.mxu1  ;;  %v1499_v39 = vadd.f32 %v1498_v3, %v304_v37  ;;  %v1538_v40 = vadd.f32 %v1537_v2, %v1497_v38  ;;  %v5342_v38 = vld [vmem:[%s6198_s6 + $0xa4] ss:$16 sps:$4 sm:$0xff]  }
 0x122   :  { %v1500_v35 = vpop.f32.mrf.mxu0 }
 0x123   :  { %v1541_v5 = vpop.f32.mrf.mxu1  ;;  %v1540_v42 = vadd.f32 %v1539_v4, %v1499_v39  ;;  %v5345_v39 = vld [vmem:[%s6198_s6 + $0xac] ss:$16 sps:$4 sm:$0xff]  }
 0x124   :  { %v1501_v8 = vpop.f32.mrf.mxu0 }
 0x125   :  { %v1542_v9 = vpop.f32.mrf.mxu1 }
 0x13f   :  { %v1619_v24 = vpop.f32.mrf.mxu1 }
 0x141   :  { %v1621_v25 = vpop.f32.mrf.mxu1 }
 0x143   :  { %v1623_v28 = vpop.f32.mrf.mxu1 }
 0x144   :  { %v5339_v28 = vld [vmem:[%s6198_s6 + $0xcc] ss:$16 sps:$4 sm:$0xff]  }
 0x145   :  { %v1624_v29 = vpop.f32.mrf.mxu1 }
 0x146   :  { %v5334_v29 = vld [vmem:[%s6198_s6 + $0xc0] ss:$16 sps:$4 sm:$0xff]  }
 0x15e   :  { %v1578_v41 = vpop.f32.mrf.mxu0 }
 0x15f   :  { %v1579_v43 = vadd.f32 %v1578_v41, %v1538_v40  ;;  %v5340_v40 = vld [vmem:[%s6198_s6 + $0xa0] ss:$16 sps:$4 sm:$0xff]   ;;  %v5343_v41 = vld [vmem:[%s6198_s6 + $0xa8] ss:$16 sps:$4 sm:$0xff]  }
 0x160   :  { %v1580_v44 = vpop.f32.mrf.mxu0 }
 0x161   :  { %v1620_v45 = vadd.f32 %v1619_v24, %v1579_v43  ;;  %v1581_v46 = vadd.f32 %v1580_v44, %v1540_v42  ;;  %v5328_v24 = vld [vmem:[%s6198_s6 + $0xe0] ss:$16 sps:$4 sm:$0xff]   ;;  %v5348_v42 = vld [vmem:[%s6198_s6 + $0x84] ss:$16 sps:$4 sm:$0xff]   ;;  %v5351_v43 = vld [vmem:[%s6198_s6 + $0x8c] ss:$16 sps:$4 sm:$0xff]  }
 0x162   :  { %v1582_v48 = vpop.f32.mrf.mxu0  ;;  %v5346_v44 = vld [vmem:[%s6198_s6 + $0x80] ss:$16 sps:$4 sm:$0xff]  }
 0x163   :  { %v1622_v49 = vadd.f32 %v1621_v25, %v1581_v46  ;;  %v1790_v50 = vmax.f32 %v1620_v45, 0.0  ;;  %v5330_v25 = vld [vmem:[%s6198_s6 + $0xe4] ss:$16 sps:$4 sm:$0xff]   ;;  %v5349_v45 = vld [vmem:[%s6198_s6 + $0x88] ss:$16 sps:$4 sm:$0xff]  }
 0x164   :  { %v1583_v52 = vpop.f32.mrf.mxu0  ;;  %2365 = vmatprep.subr.bf16.mxu0 %v5330_v25  ;;  %v5354_v46 = vld [vmem:[%s6198_s6 + $0x64] ss:$16 sps:$4 sm:$0xff]   ;;  %v5352_v48 = vld [vmem:[%s6198_s6 + $0x60] ss:$16 sps:$4 sm:$0xff]  }
 0x165   :  { %v1791_v53 = vmax.f32 %v1622_v49, 0.0  ;;  %v1794_v55 = vpack.c.bf16 %v1790_v50, %v1790_v50  ;;  %v5355_v49 = vld [vmem:[%s6198_s6 + $0x68] ss:$16 sps:$4 sm:$0xff]   ;;  %v5357_v50 = vld [vmem:[%s6198_s6 + $0x6c] ss:$16 sps:$4 sm:$0xff]  }
 0x166   :  { %v4552_v52 = vld [vmem:[%s6197_s5] ss:$0 sm:$0xff]  ;;  %v5385_v25 = vld [vmem:[#allocation5 + $0x4d0] ss:$28 sps:$4 sm:$0xff]  }
 0x167   :  { %v1795_v54 = vpack.c.bf16 %v1791_v53, %v1791_v53 }
 0x169   :  { %2093 = vmatprep.mubr.bf16.mxu0 %v1795_v54  ;;  %v5360_v54 = vld [vmem:[%s6198_s6 + $0x44] ss:$16 sps:$4 sm:$0xff]  }
 0x16a   :  { %2094 = vmatmul.mubr.bf16.vlgmr.msra.gmra.mxu0 %v1794_v55  ;;  %v5363_v55 = vld [vmem:[%s6198_s6 + $0x4c] ss:$16 sps:$4 sm:$0xff]  }
 0x16b   :  { %2397 = vmatprep.mubr.bf16.mxu0 %v5799_v16  ;;  %2366 = vmatpush1.bf16.msra.mxu0 %v5328_v24  ;;  %v5382_v24 = vld [vmem:[#allocation5 + $0x150] ss:$28 sps:$4 sm:$0xff]  }
 0x17f   :  { %v1660_v56 = vpop.f32.mrf.mxu1 }
 0x180   :  { %v1661_v1 = vadd.f32 %v1660_v56, %v308_v0  ;;  %v5369_v0 = vld [vmem:[%s6198_s6 + $0x2c] ss:$16 sps:$4 sm:$0xff]  }
 0x181   :  { %v1662_v57 = vpop.f32.mrf.mxu1 }
 0x182   :  { %v1663_v2 = vadd.f32 %v1662_v57, %v312_v6 }
 0x183   :  { %v1664_v58 = vpop.f32.mrf.mxu1 }
 0x185   :  { %v1665_v15 = vpop.f32.mrf.mxu1 }
 0x186   :  { %v5358_v15 = vld [vmem:[%s6198_s6 + $0x40] ss:$16 sps:$4 sm:$0xff]  }
 0x19e   :  { %v1701_v59 = vpop.f32.mrf.mxu0 }
 0x19f   :  { %v1702_v3 = vadd.f32 %v1701_v59, %v1661_v1  ;;  %v5364_v1 = vld [vmem:[%s6198_s6 + $0x20] ss:$16 sps:$4 sm:$0xff]  }
 0x1a0   :  { %v1703_v60 = vpop.f32.mrf.mxu0 }
 0x1a1   :  { %v1704_v5 = vadd.f32 %v1703_v60, %v1663_v2  ;;  %v5361_v60 = vld [vmem:[%s6198_s6 + $0x48] ss:$16 sps:$4 sm:$0xff]  }
 0x1a2   :  { %v1705_v61 = vpop.f32.mrf.mxu0  ;;  %v5367_v2 = vld [vmem:[%s6198_s6 + $0x28] ss:$16 sps:$4 sm:$0xff]  }
 0x1a3   :  { %v5366_v61 = vld [vmem:[%s6198_s6 + $0x24] ss:$16 sps:$4 sm:$0xff]  }
 0x1a4   :  { %v1706_v62 = vpop.f32.mrf.mxu0 }
 0x1be   :  { %v1783_v35 = vpop.f32.mrf.mxu0 }
 0x1bf   :  { %v1742_v4 = vpop.f32.mrf.mxu1 }
 0x1c0   :  { %v1743_v8 = vadd.f32 %v1742_v4, %v1702_v3  ;;  %v1785_v10 = vpop.f32.mrf.mxu0  ;;  %v5372_v3 = vld [vmem:[%s6198_s6 + $0x4] ss:$16 sps:$4 sm:$0xff]   ;;  %v5375_v4 = vld [vmem:[%s6198_s6 + $0xc] ss:$16 sps:$4 sm:$0xff]  }
 0x1c1   :  { %v1744_v9 = vpop.f32.mrf.mxu1 }
 0x1c2   :  { %v1784_v11 = vadd.f32 %v1783_v35, %v1743_v8  ;;  %v1745_v12 = vadd.f32 %v1744_v9, %v1704_v5  ;;  %v1787_v14 = vpop.f32.mrf.mxu0  ;;  %v5370_v35 = vld [vmem:[%s6198_s6] ss:$16 sps:$4 sm:$0xff]   ;;  %v5373_v5 = vld [vmem:[%s6198_s6 + $0x8] ss:$16 sps:$4 sm:$0xff]  }
 0x1c3   :  { %v1746_v13 = vpop.f32.mrf.mxu1  ;;  %v5378_v8 = vld [vmem:[#allocation5 + $0x18c] ss:$28 sps:$4 sm:$0xff]  }
 0x1c4   :  { %v1786_v17 = vadd.f32 %v1785_v10, %v1745_v12  ;;  %v1792_v18 = vmax.f32 %v1784_v11, 0.0  ;;  %v1788_v20 = vpop.f32.mrf.mxu0  ;;  %v5381_v9 = vld [vmem:[#allocation5 + $0x50c] ss:$28 sps:$4 sm:$0xff]   ;;  %v2144_v13 = vld [vmem:[%s6193_s1] sm:$0xff] }
 0x1c5   :  { %v1747_v19 = vpop.f32.mrf.mxu1  ;;  %v5379_v20 = vld [vmem:[#allocation5 + $0x508] ss:$28 sps:$4 sm:$0xff]  }
 0x1c6   :  { %v1793_v21 = vmax.f32 %v1786_v17, 0.0  ;;  %v1796_v23 = vpack.c.bf16 %v1792_v18, %v1792_v18  ;;  %v5376_v19 = vld [vmem:[#allocation5 + $0x188] ss:$28 sps:$4 sm:$0xff]  }
 0x1c8   :  { %v1797_v22 = vpack.c.bf16 %v1793_v21, %v1793_v21 }
 0x1ca   :  { %2133 = vmatprep.mubr.bf16.mxu1 %v1797_v22  ;;  %v5384_v22 = vld [vmem:[#allocation5 + $0x154] ss:$28 sps:$4 sm:$0xff]  }
 0x1cb   :  { %2134 = vmatmul.mubr.bf16.vlgmr.msra.gmra.mxu1 %v1796_v23  ;;  %v5387_v23 = vld [vmem:[#allocation5 + $0x4d4] ss:$28 sps:$4 sm:$0xff]  }
 0x1cc   :  { %2438 = vmatprep.mubr.bf16.mxu1 %v5799_v16  ;;  %v5336_v16 = vld [vmem:[%s6198_s6 + $0xc4] ss:$16 sps:$4 sm:$0xff]   ;;  %2407 = vmatpush1.bf16.msra.mxu1 %v5331_v26  ;;  %v5390_v26 = vld [vmem:[#allocation5 + $0x11c] ss:$28 sps:$4 sm:$0xff]  }
 0x1cd   :  { %2367 = vmatprep.subr.bf16.mxu0 %v5336_v16  ;;  %2408 = vmatprep.subr.bf16.mxu1 %v5339_v28  ;;  %v5388_v16 = vld [vmem:[#allocation5 + $0x118] ss:$28 sps:$4 sm:$0xff]  }
 0x1ce   :  { %2368 = vmatpush1.bf16.msra.mxu0 %v5334_v29  ;;  %v5391_v28 = vld [vmem:[#allocation5 + $0x498] ss:$28 sps:$4 sm:$0xff]   ;;  %v5396_v29 = vld [vmem:[#allocation5 + $0xe4] ss:$28 sps:$4 sm:$0xff]  }
 0x1cf   :  { %2369 = vmatprep.subr.bf16.mxu0 %v5342_v38  ;;  %v5403_v38 = vld [vmem:[#allocation5 + $0x428] ss:$28 sps:$4 sm:$0xff]  }
 0x1d0   :  { %2409 = vmatpush1.bf16.msra.mxu1 %v5337_v30  ;;  %v5399_v30 = vld [vmem:[#allocation5 + $0x464] ss:$28 sps:$4 sm:$0xff]  }
 0x1d1   :  { %2410 = vmatprep.subr.bf16.mxu1 %v5345_v39  ;;  %v5408_v39 = vld [vmem:[#allocation5 + $0x74] ss:$28 sps:$4 sm:$0xff]  }
 0x1d2   :  { %2370 = vmatpush1.bf16.msra.mxu0 %v5340_v40  ;;  %v5411_v40 = vld [vmem:[#allocation5 + $0x3f4] ss:$28 sps:$4 sm:$0xff]  }
 0x1d3   :  { %2371 = vmatprep.subr.bf16.mxu0 %v5348_v42  ;;  %v5409_v42 = vld [vmem:[#allocation5 + $0x3f0] ss:$28 sps:$4 sm:$0xff]  }
 0x1d4   :  { %2411 = vmatpush1.bf16.msra.mxu1 %v5343_v41  ;;  %v5406_v41 = vld [vmem:[#allocation5 + $0x70] ss:$28 sps:$4 sm:$0xff]  }
 0x1d5   :  { %2412 = vmatprep.subr.bf16.mxu1 %v5351_v43  ;;  %v5414_v43 = vld [vmem:[#allocation5 + $0x3c] ss:$28 sps:$4 sm:$0xff]  }
 0x1d6   :  { %2372 = vmatpush1.bf16.msra.mxu0 %v5346_v44  ;;  %v5417_v44 = vld [vmem:[#allocation5 + $0x3bc] ss:$28 sps:$4 sm:$0xff]  }
 0x1d7   :  { %2373 = vmatprep.subr.bf16.mxu0 %v5354_v46  ;;  %v5415_v46 = vld [vmem:[#allocation5 + $0x3b8] ss:$28 sps:$4 sm:$0xff]  }
 0x1d8   :  { %2413 = vmatpush1.bf16.msra.mxu1 %v5349_v45  ;;  %v5412_v45 = vld [vmem:[#allocation5 + $0x38] ss:$28 sps:$4 sm:$0xff]  }
 0x1d9   :  { %2414 = vmatprep.subr.bf16.mxu1 %v5357_v50  ;;  %v5418_v50 = vld [vmem:[#allocation5] ss:$28 sps:$4 sm:$0xff]  }
 0x1da   :  { %2374 = vmatpush1.bf16.msra.mxu0 %v5352_v48  ;;  %v5420_v48 = vld [vmem:[#allocation5 + $0x4] ss:$28 sps:$4 sm:$0xff]  }
 0x1db   :  { %2375 = vmatprep.subr.bf16.mxu0 %v5360_v54  ;;  %v5429_v54 = vld [vmem:[#allocation5 + $0x6cc] ss:$28 sps:$4 sm:$0xff]  }
 0x1dc   :  { %2415 = vmatpush1.bf16.msra.mxu1 %v5355_v49  ;;  %v5423_v49 = vld [vmem:[#allocation5 + $0x384] ss:$28 sps:$4 sm:$0xff]  }
 0x1dd   :  { %2416 = vmatprep.subr.bf16.mxu1 %v5363_v55  ;;  %v5424_v55 = vld [vmem:[#allocation5 + $0x348] ss:$28 sps:$4 sm:$0xff]  }
 0x1de   :  { %2376 = vmatpush1.bf16.msra.mxu0 %v5358_v15  ;;  %v5430_v15 = vld [vmem:[#allocation5 + $0x310] ss:$28 sps:$4 sm:$0xff]  }
 0x1df   :  { %2377 = vmatprep.subr.bf16.mxu0 %v5366_v61  ;;  %v5441_v61 = vld [vmem:[#allocation5 + $0x65c] ss:$28 sps:$4 sm:$0xff]  }
 0x1e0   :  { %2417 = vmatpush1.bf16.msra.mxu1 %v5361_v60  ;;  %v5438_v60 = vld [vmem:[#allocation5 + $0x2dc] ss:$28 sps:$4 sm:$0xff]  }
 0x1e1   :  { %2418 = vmatprep.subr.bf16.mxu1 %v5369_v0  ;;  %v5439_v0 = vld [vmem:[#allocation5 + $0x658] ss:$28 sps:$4 sm:$0xff]  }
 0x1e2   :  { %2378 = vmatpush1.bf16.msra.mxu0 %v5364_v1  ;;  %v5447_v1 = vld [vmem:[#allocation5 + $0x624] ss:$28 sps:$4 sm:$0xff]  }
 0x1e3   :  { %2379 = vmatprep.subr.bf16.mxu0 %v5372_v3  ;;  %v5445_v3 = vld [vmem:[#allocation5 + $0x620] ss:$28 sps:$4 sm:$0xff]  }
 0x1e4   :  { %2419 = vmatpush1.bf16.msra.mxu1 %v5367_v2  ;;  %v5442_v2 = vld [vmem:[#allocation5 + $0x2a0] ss:$28 sps:$4 sm:$0xff]  }
 0x1e5   :  { %2420 = vmatprep.subr.bf16.mxu1 %v5375_v4  ;;  %v5450_v4 = vld [vmem:[#allocation5 + $0x26c] ss:$28 sps:$4 sm:$0xff]  }
 0x1e6   :  { %2380 = vmatpush1.bf16.msra.mxu0 %v5370_v35  ;;  %v5453_v35 = vld [vmem:[#allocation5 + $0x5ec] ss:$28 sps:$4 sm:$0xff]  }
 0x1e7   :  { %3900 = vmatprep.subr.bf16.mxu0 %v5378_v8  ;;  %v5451_v8 = vld [vmem:[#allocation5 + $0x5e8] ss:$28 sps:$4 sm:$0xff]  }
 0x1e8   :  { %2421 = vmatpush1.bf16.msra.mxu1 %v5373_v5  ;;  %v5448_v5 = vld [vmem:[#allocation5 + $0x268] ss:$28 sps:$4 sm:$0xff]  }
 0x1e9   :  { %3941 = vmatprep.subr.bf16.mxu1 %v5381_v9  ;;  %v5456_v9 = vld [vmem:[#allocation5 + $0x234] ss:$28 sps:$4 sm:$0xff]  }
 0x22a   :  { %v4872_v31 = vpop.f32.mrf.mxu0 }
 0x22c   :  { %v4873_v32 = vpop.f32.mrf.mxu0 }
 0x22d   :  { %v4874_v7 = vadd.f32 %v4873_v32, %v4872_v31  ;;  %v5394_v31 = vld [vmem:[#allocation5 + $0xe0] ss:$28 sps:$4 sm:$0xff]  }
 0x22e   :  { %v4875_v36 = vpop.f32.mrf.mxu0  ;;  %v5397_v32 = vld [vmem:[#allocation5 + $0x460] ss:$28 sps:$4 sm:$0xff]  }
 0x22f   :  { %v2096_v57 = vadd.f32 %v4874_v7, %v4552_v52  ;;  %v5402_v7 = vld [vmem:[#allocation5 + $0xac] ss:$28 sps:$4 sm:$0xff]   ;;  %v5421_v52 = vld [vmem:[#allocation5 + $0x380] ss:$28 sps:$4 sm:$0xff]  }
 0x230   :  { %v4876_v37 = vpop.f32.mrf.mxu0  ;;  %v5405_v36 = vld [vmem:[#allocation5 + $0x42c] ss:$28 sps:$4 sm:$0xff]  }
 0x231   :  { %v5400_v37 = vld [vmem:[#allocation5 + $0xa8] ss:$28 sps:$4 sm:$0xff]  }
 0x28b   :  { %v4894_v53 = vpop.f32.mrf.mxu1 }
 0x28d   :  { %v4895_v56 = vpop.f32.mrf.mxu1 }
 0x28e   :  { %v4896_v58 = vadd.f32 %v4895_v56, %v4894_v53  ;;  %v5426_v53 = vld [vmem:[#allocation5 + $0x34c] ss:$28 sps:$4 sm:$0xff]  }
 0x28f   :  { %v4897_v59 = vpop.f32.mrf.mxu1  ;;  %v5427_v56 = vld [vmem:[#allocation5 + $0x6c8] ss:$28 sps:$4 sm:$0xff]  }
 0x290   :  { %v2136_v62 = vadd.f32 %v4896_v58, %v2096_v57  ;;  %v5432_v57 = vld [vmem:[#allocation5 + $0x314] ss:$28 sps:$4 sm:$0xff]  }
 0x291   :  { %v4898_v6 = vpop.f32.mrf.mxu1  ;;  %v5435_v58 = vld [vmem:[#allocation5 + $0x694] ss:$28 sps:$4 sm:$0xff]  }
 0x292   :  { %2141 = vst [vmem:[%s6203_s11] sm:$0xff] %v2136_v62  ;;  %2142 = vrot.lane.b32.xlu0 %v2136_v62, %s5800_s25  ;;  %v5433_v59 = vld [vmem:[#allocation5 + $0x690] ss:$28 sps:$4 sm:$0xff]   ;;  %v5444_v6 = vld [vmem:[#allocation5 + $0x2a4] ss:$28 sps:$4 sm:$0xff]  }
 0x304   :  { %v2143_v10 = vpop.permute.xlu0 %2142 }
 0x305   :  { %v2145_v11 = vmul.f32 0.5, %v2143_v10  ;;  %v5459_v10 = vld [vmem:[#allocation5 + $0x5b4] ss:$28 sps:$4 sm:$0xff]  }
 0x307   :  { %v2146_v12 = vmul.f32 1.442695, %v2145_v11  ;;  %v5454_v11 = vld [vmem:[#allocation5 + $0x230] ss:$28 sps:$4 sm:$0xff]  }
 0x309   :  { %5696 = vpow2.f32 %v2146_v12  ;;  %v5457_v12 = vld [vmem:[#allocation5 + $0x5b0] ss:$28 sps:$4 sm:$0xff]  }
 0x316   :  { %v5697_v14 = vpop.eup %5696 }
 0x317   :  { %v2148_v17 = vmul.f32 %v5697_v14, %v2144_v13  ;;  %v5462_v13 = vld [vmem:[#allocation5 + $0x1fc] ss:$28 sps:$4 sm:$0xff]  }
 0x318   :  { %v5465_v14 = vld [vmem:[#allocation5 + $0x57c] ss:$28 sps:$4 sm:$0xff]  }
 0x319   :  { %v2149_v18 = vadd.f32 %v2148_v17, %v2136_v62  ;;  %v5436_v62 = vld [vmem:[#allocation5 + $0x2d8] ss:$28 sps:$4 sm:$0xff]  }
 0x31a   :  { %v5460_v17 = vld [vmem:[#allocation5 + $0x1f8] ss:$28 sps:$4 sm:$0xff]  }
 0x31b   :  { %v2150_v21 = vpack.c.bf16 %v2149_v18, %v2149_v18  ;;  %v5463_v18 = vld [vmem:[#allocation5 + $0x578] ss:$28 sps:$4 sm:$0xff]  }
 0x31d   :  { %2398 = vmatmul.mubr.bf16.vlgmr.msra.gmra.mxu0 %v2150_v21  ;;  %2439 = vmatmul.mubr.bf16.vlgmr.msra.gmra.mxu1 %v2150_v21  ;;  %v5466_v21 = vld [vmem:[#allocation5 + $0x1c0] ss:$28 sps:$4 sm:$0xff]  }
 0x31e   :  { %3901 = vmatpush1.bf16.msra.mxu0 %v5376_v19  ;;  %3942 = vmatpush1.bf16.msra.mxu1 %v5379_v20  ;;  %v5468_v19 = vld [vmem:[#allocation5 + $0x1c4] ss:$28 sps:$4 sm:$0xff]  }
 0x31f   :  { %3902 = vmatprep.subr.bf16.mxu0 %v5384_v22  ;;  %3943 = vmatprep.subr.bf16.mxu1 %v5387_v23  ;;  %v5471_v20 = vld [vmem:[#allocation5 + $0x544] ss:$28 sps:$4 sm:$0xff]   ;;  %v5474_v23 = vld [vmem:[#allocation5 + $0x194] ss:$28 sps:$4 sm:$0xff]  }
 0x320   :  { %v5469_v22 = vld [vmem:[#allocation5 + $0x540] ss:$28 sps:$4 sm:$0xff]  }
 0x322   :  { %3903 = vmatpush1.bf16.msra.mxu0 %v5382_v24  ;;  %3944 = vmatpush1.bf16.msra.mxu1 %v5385_v25  ;;  %v5477_v24 = vld [vmem:[#allocation5 + $0x514] ss:$28 sps:$4 sm:$0xff]   ;;  %v2183_v25 = vld [vmem:[%s6199_s7] sm:$0xf] }
 0x323   :  { %3904 = vmatprep.subr.bf16.mxu0 %v5390_v26  ;;  %3945 = vmatprep.subr.bf16.mxu1 %v5393_v27  ;;  %v2188_v26 = vrot.slane %v2183_v25, %v6014_v51  ;;  %v2196_v27 = vrot.slane %v2183_v25, %v6026_v47 }
 0x326   :  { %3905 = vmatpush1.bf16.msra.mxu0 %v5388_v16  ;;  %3946 = vmatpush1.bf16.msra.mxu1 %v5391_v28  ;;  %v2192_v16 = vrot.slane %v2183_v25, %v6020_v34  ;;  %v2200_v28 = vrot.slane %v2183_v25, %v6029_v63  ;;  %v5528_v25 = vld [vmem:[#allocation5 + $0x31c] ss:$28 sps:$4 sm:$0xff]  }
 0x327   :  { %3906 = vmatprep.subr.bf16.mxu0 %v5396_v29  ;;  %3947 = vmatprep.subr.bf16.mxu1 %v5399_v30 }
 0x32a   :  { %3907 = vmatpush1.bf16.msra.mxu0 %v5394_v31  ;;  %3948 = vmatpush1.bf16.msra.mxu1 %v5397_v32 }
 0x32b   :  { %3908 = vmatprep.subr.bf16.mxu0 %v5402_v7  ;;  %3949 = vmatprep.subr.bf16.mxu1 %v5405_v36 }
 0x32e   :  { %3909 = vmatpush1.bf16.msra.mxu0 %v5400_v37  ;;  %3950 = vmatpush1.bf16.msra.mxu1 %v5403_v38 }
 0x32f   :  { %3910 = vmatprep.subr.bf16.mxu0 %v5408_v39  ;;  %3951 = vmatprep.subr.bf16.mxu1 %v5411_v40 }
 0x332   :  { %3911 = vmatpush1.bf16.msra.mxu0 %v5406_v41  ;;  %3952 = vmatpush1.bf16.msra.mxu1 %v5409_v42 }
 0x333   :  { %3912 = vmatprep.subr.bf16.mxu0 %v5414_v43  ;;  %3953 = vmatprep.subr.bf16.mxu1 %v5417_v44 }
 0x336   :  { %3913 = vmatpush1.bf16.msra.mxu0 %v5412_v45  ;;  %3954 = vmatpush1.bf16.msra.mxu1 %v5415_v46 }
 0x337   :  { %3914 = vmatprep.subr.bf16.mxu0 %v5420_v48  ;;  %3955 = vmatprep.subr.bf16.mxu1 %v5423_v49 }
 0x33a   :  { %3915 = vmatpush1.bf16.msra.mxu0 %v5418_v50  ;;  %3956 = vmatpush1.bf16.msra.mxu1 %v5421_v52  ;;  %v5472_v50 = vld [vmem:[#allocation5 + $0x190] ss:$28 sps:$4 sm:$0xff]  }
 0x33b   :  { %3916 = vmatprep.subr.bf16.mxu0 %v5426_v53  ;;  %3957 = vmatprep.subr.bf16.mxu1 %v5429_v54  ;;  %v5475_v52 = vld [vmem:[#allocation5 + $0x510] ss:$28 sps:$4 sm:$0xff]  }
 0x33e   :  { %3917 = vmatpush2.bf16.msra.mxu0 %v5424_v55  ;;  %3958 = vmatpush2.bf16.msra.mxu1 %v5427_v56  ;;  %v5480_v55 = vld [vmem:[#allocation5 + $0x15c] ss:$28 sps:$4 sm:$0xff]  }
 0x33f   :  { %3918 = vmatprep.subr.bf16.mxu0 %v5432_v57  ;;  %3959 = vmatprep.subr.bf16.mxu1 %v5435_v58  ;;  %v5483_v56 = vld [vmem:[#allocation5 + $0x4dc] ss:$28 sps:$4 sm:$0xff]  }
 0x340   :  { %v5478_v57 = vld [vmem:[#allocation5 + $0x158] ss:$28 sps:$4 sm:$0xff]  }
 0x341   :  { %v5481_v58 = vld [vmem:[#allocation5 + $0x4d8] ss:$28 sps:$4 sm:$0xff]  }
 0x342   :  { %3919 = vmatpush2.bf16.msra.mxu0 %v5430_v15  ;;  %3960 = vmatpush2.bf16.msra.mxu1 %v5433_v59  ;;  %v5486_v15 = vld [vmem:[#allocation5 + $0x124] ss:$28 sps:$4 sm:$0xff]  }
 0x343   :  { %3920 = vmatprep.subr.bf16.mxu0 %v5438_v60  ;;  %3961 = vmatprep.subr.bf16.mxu1 %v5441_v61  ;;  %v5489_v59 = vld [vmem:[#allocation5 + $0x4a4] ss:$28 sps:$4 sm:$0xff]  }
 0x344   :  { %v5484_v60 = vld [vmem:[#allocation5 + $0x120] ss:$28 sps:$4 sm:$0xff]  }
 0x345   :  { %v5487_v61 = vld [vmem:[#allocation5 + $0x4a0] ss:$28 sps:$4 sm:$0xff]  }
 0x346   :  { %3921 = vmatpush2.bf16.msra.mxu0 %v5436_v62  ;;  %3962 = vmatpush2.bf16.msra.mxu1 %v5439_v0  ;;  %v5492_v62 = vld [vmem:[#allocation5 + $0xec] ss:$28 sps:$4 sm:$0xff]  }
 0x347   :  { %3922 = vmatprep.subr.bf16.mxu0 %v5444_v6  ;;  %3963 = vmatprep.subr.bf16.mxu1 %v5447_v1  ;;  %v5495_v0 = vld [vmem:[#allocation5 + $0x46c] ss:$28 sps:$4 sm:$0xff]  }
 0x348   :  { %v5490_v6 = vld [vmem:[#allocation5 + $0xe8] ss:$28 sps:$4 sm:$0xff]  }
 0x349   :  { %v5493_v1 = vld [vmem:[#allocation5 + $0x468] ss:$28 sps:$4 sm:$0xff]  }
 0x34a   :  { %3923 = vmatpush2.bf16.msra.mxu0 %v5442_v2  ;;  %3964 = vmatpush2.bf16.msra.mxu1 %v5445_v3  ;;  %v5498_v2 = vld [vmem:[#allocation5 + $0xb4] ss:$28 sps:$4 sm:$0xff]  }
 0x34b   :  { %3924 = vmatprep.subr.bf16.mxu0 %v5450_v4  ;;  %3965 = vmatprep.subr.bf16.mxu1 %v5453_v35  ;;  %v5501_v3 = vld [vmem:[#allocation5 + $0x434] ss:$28 sps:$4 sm:$0xff]  }
 0x34c   :  { %v5496_v4 = vld [vmem:[#allocation5 + $0xb0] ss:$28 sps:$4 sm:$0xff]  }
 0x34d   :  { %v5499_v35 = vld [vmem:[#allocation5 + $0x430] ss:$28 sps:$4 sm:$0xff]  }
 0x34e   :  { %3925 = vmatpush2.bf16.msra.mxu0 %v5448_v5  ;;  %3966 = vmatpush2.bf16.msra.mxu1 %v5451_v8  ;;  %v5504_v5 = vld [vmem:[#allocation5 + $0x7c] ss:$28 sps:$4 sm:$0xff]  }
 0x34f   :  { %3926 = vmatprep.subr.bf16.mxu0 %v5456_v9  ;;  %3967 = vmatprep.subr.bf16.mxu1 %v5459_v10  ;;  %v5507_v8 = vld [vmem:[#allocation5 + $0x3fc] ss:$28 sps:$4 sm:$0xff]  }
 0x350   :  { %v5502_v9 = vld [vmem:[#allocation5 + $0x78] ss:$28 sps:$4 sm:$0xff]  }
 0x351   :  { %v5505_v10 = vld [vmem:[#allocation5 + $0x3f8] ss:$28 sps:$4 sm:$0xff]  }
 0x352   :  { %3927 = vmatpush2.bf16.msra.mxu0 %v5454_v11  ;;  %3968 = vmatpush2.bf16.msra.mxu1 %v5457_v12  ;;  %v5510_v11 = vld [vmem:[#allocation5 + $0x44] ss:$28 sps:$4 sm:$0xff]  }
 0x353   :  { %3928 = vmatprep.subr.bf16.mxu0 %v5462_v13  ;;  %3969 = vmatprep.subr.bf16.mxu1 %v5465_v14  ;;  %v5513_v12 = vld [vmem:[#allocation5 + $0x3c4] ss:$28 sps:$4 sm:$0xff]  }
 0x354   :  { %v5508_v13 = vld [vmem:[#allocation5 + $0x40] ss:$28 sps:$4 sm:$0xff]  }
 0x355   :  { %v5511_v14 = vld [vmem:[#allocation5 + $0x3c0] ss:$28 sps:$4 sm:$0xff]  }
 0x356   :  { %3929 = vmatpush2.bf16.msra.mxu0 %v5460_v17  ;;  %3970 = vmatpush2.bf16.msra.mxu1 %v5463_v18  ;;  %v5516_v17 = vld [vmem:[#allocation5 + $0xc] ss:$28 sps:$4 sm:$0xff]  }
 0x357   :  { %3930 = vmatprep.subr.bf16.mxu0 %v5468_v19  ;;  %3971 = vmatprep.subr.bf16.mxu1 %v5471_v20  ;;  %v5519_v18 = vld [vmem:[#allocation5 + $0x38c] ss:$28 sps:$4 sm:$0xff]  }
 0x358   :  { %v5514_v19 = vld [vmem:[#allocation5 + $0x8] ss:$28 sps:$4 sm:$0xff]  }
 0x359   :  { %v5517_v20 = vld [vmem:[#allocation5 + $0x388] ss:$28 sps:$4 sm:$0xff]  }
 0x35a   :  { %3931 = vmatpush2.bf16.msra.mxu0 %v5466_v21  ;;  %3972 = vmatpush2.bf16.msra.mxu1 %v5469_v22  ;;  %v5522_v21 = vld [vmem:[#allocation5 + $0x354] ss:$28 sps:$4 sm:$0xff]  }
 0x35b   :  { %3982 = vmatprep.subr.bf16.mxu0 %v5474_v23  ;;  %4023 = vmatprep.subr.bf16.mxu1 %v5477_v24  ;;  %v5525_v22 = vld [vmem:[#allocation5 + $0x6d4] ss:$28 sps:$4 sm:$0xff]  }
 0x35c   :  { %v5520_v23 = vld [vmem:[#allocation5 + $0x350] ss:$28 sps:$4 sm:$0xff]  }
 0x35d   :  { %v5523_v24 = vld [vmem:[#allocation5 + $0x6d0] ss:$28 sps:$4 sm:$0xff]  }
 0x3dd   :  { %v2399_v29 = vpop.f32.mrf.mxu0  ;;  %v2440_v30 = vpop.f32.mrf.mxu1 }
 0x3de   :  { %v2400_v31 = vadd.f32 %v2399_v29, %v2188_v26  ;;  %v2441_v32 = vadd.f32 %v2440_v30, %v2196_v27  ;;  %v5531_v26 = vld [vmem:[#allocation5 + $0x69c] ss:$28 sps:$4 sm:$0xff]   ;;  %v5537_v29 = vld [vmem:[#allocation5 + $0x664] ss:$28 sps:$4 sm:$0xff]  }
 0x3df   :  { %v2401_v7 = vpop.f32.mrf.mxu0  ;;  %v2442_v36 = vpop.f32.mrf.mxu1  ;;  %v5526_v27 = vld [vmem:[#allocation5 + $0x318] ss:$28 sps:$4 sm:$0xff]   ;;  %v5532_v30 = vld [vmem:[#allocation5 + $0x2e0] ss:$28 sps:$4 sm:$0xff]  }
 0x3e0   :  { %v2402_v37 = vadd.f32 %v2401_v7, %v2192_v16  ;;  %v2443_v38 = vadd.f32 %v2442_v36, %v2200_v28  ;;  %v2447_v39 = vmax.f32 %v2400_v31, 0.0  ;;  %v2449_v40 = vmax.f32 %v2441_v32, 0.0  ;;  %v5529_v16 = vld [vmem:[#allocation5 + $0x698] ss:$28 sps:$4 sm:$0xff]   ;;  %v5534_v28 = vld [vmem:[#allocation5 + $0x2e4] ss:$28 sps:$4 sm:$0xff]  }
 0x3e1   :  { %v2403_v41 = vpop.f32.mrf.mxu0  ;;  %v2444_v42 = vpop.f32.mrf.mxu1  ;;  %v5535_v31 = vld [vmem:[#allocation5 + $0x660] ss:$28 sps:$4 sm:$0xff]   ;;  %v5540_v32 = vld [vmem:[#allocation5 + $0x2ac] ss:$28 sps:$4 sm:$0xff]  }
 0x3e2   :  { %v2448_v43 = vmax.f32 %v2402_v37, 0.0  ;;  %v2450_v44 = vmax.f32 %v2443_v38, 0.0  ;;  %v6150_v53 = vpack.c.bf16 %v2447_v39, %v2447_v39  ;;  %v6152_v54 = vpack.c.bf16 %v2449_v40, %v2449_v40  ;;  %v5543_v7 = vld [vmem:[#allocation5 + $0x62c] ss:$28 sps:$4 sm:$0xff]   ;;  %v5546_v38 = vld [vmem:[#allocation5 + $0x274] ss:$28 sps:$4 sm:$0xff]  }
 0x3e3   :  { %v2404_v45 = vpop.f32.mrf.mxu0  ;;  %v2445_v46 = vpop.f32.mrf.mxu1  ;;  %v5538_v36 = vld [vmem:[#allocation5 + $0x2a8] ss:$28 sps:$4 sm:$0xff]   ;;  %v5549_v39 = vld [vmem:[#allocation5 + $0x5f4] ss:$28 sps:$4 sm:$0xff]   ;;  %v5552_v42 = vld [vmem:[#allocation5 + $0x23c] ss:$28 sps:$4 sm:$0xff]  }
 0x3e4   :  { %v6146_v48 = vpack.c.bf16 %v2448_v43, %v2448_v43  ;;  %v6148_v49 = vpack.c.bf16 %v2450_v44, %v2450_v44  ;;  %v5541_v37 = vld [vmem:[#allocation5 + $0x628] ss:$28 sps:$4 sm:$0xff]   ;;  %v5544_v40 = vld [vmem:[#allocation5 + $0x270] ss:$28 sps:$4 sm:$0xff]   ;;  %v5555_v43 = vld [vmem:[#allocation5 + $0x5bc] ss:$28 sps:$4 sm:$0xff]  }
 0x3e5   :  { %v5547_v41 = vld [vmem:[#allocation5 + $0x5f0] ss:$28 sps:$4 sm:$0xff]   ;;  %v5550_v44 = vld [vmem:[#allocation5 + $0x238] ss:$28 sps:$4 sm:$0xff]   ;;  %v5558_v46 = vld [vmem:[#allocation5 + $0x204] ss:$28 sps:$4 sm:$0xff]  }
 0x3e6   :  { %3932 = vmatprep.mubr.bf16.mxu0 %v6146_v48  ;;  %3973 = vmatprep.mubr.bf16.mxu1 %v6148_v49  ;;  %v5553_v45 = vld [vmem:[#allocation5 + $0x5b8] ss:$28 sps:$4 sm:$0xff]  }
 0x3e7   :  { %3933 = vmatmul.mubr.bf16.vlgmr.msra.gmra.mxu0 %v6150_v53  ;;  %3974 = vmatmul.mubr.bf16.vlgmr.msra.gmra.mxu1 %v6152_v54 }
 0x3e8   :  { %3983 = vmatpush1.bf16.msra.mxu0 %v5472_v50  ;;  %4024 = vmatpush1.bf16.msra.mxu1 %v5475_v52  ;;  %v5561_v50 = vld [vmem:[#allocation5 + $0x584] ss:$28 sps:$4 sm:$0xff]  }
 0x3e9   :  { %4014 = vmatprep.mubr.bf16.mxu0 %v6146_v48  ;;  %4055 = vmatprep.mubr.bf16.mxu1 %v6148_v49  ;;  %v5556_v52 = vld [vmem:[#allocation5 + $0x200] ss:$28 sps:$4 sm:$0xff]  }
 0x3ea   :  { %3984 = vmatprep.subr.bf16.mxu0 %v5480_v55  ;;  %4025 = vmatprep.subr.bf16.mxu1 %v5483_v56  ;;  %v5559_v55 = vld [vmem:[#allocation5 + $0x580] ss:$28 sps:$4 sm:$0xff]   ;;  %v5564_v56 = vld [vmem:[#allocation5 + $0x1cc] ss:$28 sps:$4 sm:$0xff]  }
 0x3ec   :  { %3985 = vmatpush1.bf16.msra.mxu0 %v5478_v57  ;;  %4026 = vmatpush1.bf16.msra.mxu1 %v5481_v58  ;;  %v5567_v57 = vld [vmem:[#allocation5 + $0x54c] ss:$28 sps:$4 sm:$0xff]  }
 0x3ed   :  { %3986 = vmatprep.subr.bf16.mxu0 %v5486_v15  ;;  %4027 = vmatprep.subr.bf16.mxu1 %v5489_v59  ;;  %v5562_v58 = vld [vmem:[#allocation5 + $0x1c8] ss:$28 sps:$4 sm:$0xff]   ;;  %v5570_v59 = vld [vmem:[#allocation5 + $0x19c] ss:$28 sps:$4 sm:$0xff]  }
 0x3ee   :  { %v5565_v15 = vld [vmem:[#allocation5 + $0x548] ss:$28 sps:$4 sm:$0xff]  }
 0x3f0   :  { %3987 = vmatpush1.bf16.msra.mxu0 %v5484_v60  ;;  %4028 = vmatpush1.bf16.msra.mxu1 %v5487_v61  ;;  %v5573_v60 = vld [vmem:[#allocation5 + $0x51c] ss:$28 sps:$4 sm:$0xff]  }
 0x3f1   :  { %3988 = vmatprep.subr.bf16.mxu0 %v5492_v62  ;;  %4029 = vmatprep.subr.bf16.mxu1 %v5495_v0  ;;  %v5568_v61 = vld [vmem:[#allocation5 + $0x198] ss:$28 sps:$4 sm:$0xff]   ;;  %v5576_v0 = vld [vmem:[#allocation5 + $0x164] ss:$28 sps:$4 sm:$0xff]  }
 0x3f2   :  { %v5571_v62 = vld [vmem:[#allocation5 + $0x518] ss:$28 sps:$4 sm:$0xff]  }
 0x3f4   :  { %3989 = vmatpush1.bf16.msra.mxu0 %v5490_v6  ;;  %4030 = vmatpush1.bf16.msra.mxu1 %v5493_v1  ;;  %v5579_v6 = vld [vmem:[#allocation5 + $0x4e4] ss:$28 sps:$4 sm:$0xff]  }
 0x3f5   :  { %3990 = vmatprep.subr.bf16.mxu0 %v5498_v2  ;;  %4031 = vmatprep.subr.bf16.mxu1 %v5501_v3  ;;  %v5574_v1 = vld [vmem:[#allocation5 + $0x160] ss:$28 sps:$4 sm:$0xff]   ;;  %v5582_v3 = vld [vmem:[#allocation5 + $0x12c] ss:$28 sps:$4 sm:$0xff]  }
 0x3f6   :  { %v5577_v2 = vld [vmem:[#allocation5 + $0x4e0] ss:$28 sps:$4 sm:$0xff]  }
 0x3f8   :  { %3991 = vmatpush1.bf16.msra.mxu0 %v5496_v4  ;;  %4032 = vmatpush1.bf16.msra.mxu1 %v5499_v35  ;;  %v5585_v4 = vld [vmem:[#allocation5 + $0x4ac] ss:$28 sps:$4 sm:$0xff]  }
 0x3f9   :  { %3992 = vmatprep.subr.bf16.mxu0 %v5504_v5  ;;  %4033 = vmatprep.subr.bf16.mxu1 %v5507_v8  ;;  %v5580_v35 = vld [vmem:[#allocation5 + $0x128] ss:$28 sps:$4 sm:$0xff]   ;;  %v5588_v8 = vld [vmem:[#allocation5 + $0xf4] ss:$28 sps:$4 sm:$0xff]  }
 0x3fa   :  { %v5583_v5 = vld [vmem:[#allocation5 + $0x4a8] ss:$28 sps:$4 sm:$0xff]  }
 0x3fc   :  { %3993 = vmatpush1.bf16.msra.mxu0 %v5502_v9  ;;  %4034 = vmatpush1.bf16.msra.mxu1 %v5505_v10  ;;  %v5591_v9 = vld [vmem:[#allocation5 + $0x474] ss:$28 sps:$4 sm:$0xff]  }
 0x3fd   :  { %3994 = vmatprep.subr.bf16.mxu0 %v5510_v11  ;;  %4035 = vmatprep.subr.bf16.mxu1 %v5513_v12  ;;  %v5586_v10 = vld [vmem:[#allocation5 + $0xf0] ss:$28 sps:$4 sm:$0xff]   ;;  %v5594_v12 = vld [vmem:[#allocation5 + $0xbc] ss:$28 sps:$4 sm:$0xff]  }
 0x3fe   :  { %v5589_v11 = vld [vmem:[#allocation5 + $0x470] ss:$28 sps:$4 sm:$0xff]  }
 0x400   :  { %3995 = vmatpush1.bf16.msra.mxu0 %v5508_v13  ;;  %4036 = vmatpush1.bf16.msra.mxu1 %v5511_v14  ;;  %v5597_v13 = vld [vmem:[#allocation5 + $0x43c] ss:$28 sps:$4 sm:$0xff]  }
 0x401   :  { %3996 = vmatprep.subr.bf16.mxu0 %v5516_v17  ;;  %4037 = vmatprep.subr.bf16.mxu1 %v5519_v18  ;;  %v5592_v14 = vld [vmem:[#allocation5 + $0xb8] ss:$28 sps:$4 sm:$0xff]   ;;  %v5600_v18 = vld [vmem:[#allocation5 + $0x84] ss:$28 sps:$4 sm:$0xff]  }
 0x402   :  { %v5595_v17 = vld [vmem:[#allocation5 + $0x438] ss:$28 sps:$4 sm:$0xff]  }
 0x404   :  { %3997 = vmatpush1.bf16.msra.mxu0 %v5514_v19  ;;  %4038 = vmatpush1.bf16.msra.mxu1 %v5517_v20  ;;  %v5603_v19 = vld [vmem:[#allocation5 + $0x404] ss:$28 sps:$4 sm:$0xff]  }
 0x405   :  { %3998 = vmatprep.subr.bf16.mxu0 %v5522_v21  ;;  %4039 = vmatprep.subr.bf16.mxu1 %v5525_v22  ;;  %v5598_v20 = vld [vmem:[#allocation5 + $0x80] ss:$28 sps:$4 sm:$0xff]   ;;  %v5606_v22 = vld [vmem:[#allocation5 + $0x4c] ss:$28 sps:$4 sm:$0xff]  }
 0x406   :  { %v5601_v21 = vld [vmem:[#allocation5 + $0x400] ss:$28 sps:$4 sm:$0xff]  }
 0x408   :  { %3999 = vmatpush2.bf16.msra.mxu0 %v5520_v23  ;;  %4040 = vmatpush2.bf16.msra.mxu1 %v5523_v24  ;;  %v5609_v23 = vld [vmem:[#allocation5 + $0x3cc] ss:$28 sps:$4 sm:$0xff]  }
 0x409   :  { %4000 = vmatprep.subr.bf16.mxu0 %v5528_v25  ;;  %4041 = vmatprep.subr.bf16.mxu1 %v5531_v26  ;;  %v5604_v24 = vld [vmem:[#allocation5 + $0x48] ss:$28 sps:$4 sm:$0xff]   ;;  %v5612_v26 = vld [vmem:[#allocation5 + $0x14] ss:$28 sps:$4 sm:$0xff]  }
 0x40a   :  { %v5607_v25 = vld [vmem:[#allocation5 + $0x3c8] ss:$28 sps:$4 sm:$0xff]  }
 0x40c   :  { %4001 = vmatpush2.bf16.msra.mxu0 %v5526_v27  ;;  %4042 = vmatpush2.bf16.msra.mxu1 %v5529_v16  ;;  %v5615_v27 = vld [vmem:[#allocation5 + $0x394] ss:$28 sps:$4 sm:$0xff]  }
 0x40d   :  { %4002 = vmatprep.subr.bf16.mxu0 %v5534_v28  ;;  %4043 = vmatprep.subr.bf16.mxu1 %v5537_v29  ;;  %v5610_v16 = vld [vmem:[#allocation5 + $0x10] ss:$28 sps:$4 sm:$0xff]   ;;  %v5618_v29 = vld [vmem:[#allocation5 + $0x35c] ss:$28 sps:$4 sm:$0xff]  }
 0x40e   :  { %v5613_v28 = vld [vmem:[#allocation5 + $0x390] ss:$28 sps:$4 sm:$0xff]  }
 0x410   :  { %4003 = vmatpush2.bf16.msra.mxu0 %v5532_v30  ;;  %4044 = vmatpush2.bf16.msra.mxu1 %v5535_v31  ;;  %v5621_v30 = vld [vmem:[#allocation5 + $0x6dc] ss:$28 sps:$4 sm:$0xff]  }
 0x411   :  { %4004 = vmatprep.subr.bf16.mxu0 %v5540_v32  ;;  %4045 = vmatprep.subr.bf16.mxu1 %v5543_v7  ;;  %v5616_v31 = vld [vmem:[#allocation5 + $0x358] ss:$28 sps:$4 sm:$0xff]   ;;  %v5624_v7 = vld [vmem:[#allocation5 + $0x324] ss:$28 sps:$4 sm:$0xff]  }
 0x412   :  { %v5619_v32 = vld [vmem:[#allocation5 + $0x6d8] ss:$28 sps:$4 sm:$0xff]  }
 0x414   :  { %4005 = vmatpush2.bf16.msra.mxu0 %v5538_v36  ;;  %4046 = vmatpush2.bf16.msra.mxu1 %v5541_v37  ;;  %v5627_v36 = vld [vmem:[#allocation5 + $0x6a4] ss:$28 sps:$4 sm:$0xff]  }
 0x415   :  { %4006 = vmatprep.subr.bf16.mxu0 %v5546_v38  ;;  %4047 = vmatprep.subr.bf16.mxu1 %v5549_v39  ;;  %v5622_v37 = vld [vmem:[#allocation5 + $0x320] ss:$28 sps:$4 sm:$0xff]   ;;  %v5630_v39 = vld [vmem:[#allocation5 + $0x2ec] ss:$28 sps:$4 sm:$0xff]  }
 0x416   :  { %v5625_v38 = vld [vmem:[#allocation5 + $0x6a0] ss:$28 sps:$4 sm:$0xff]  }
 0x418   :  { %4007 = vmatpush2.bf16.msra.mxu0 %v5544_v40  ;;  %4048 = vmatpush2.bf16.msra.mxu1 %v5547_v41  ;;  %v5633_v40 = vld [vmem:[#allocation5 + $0x66c] ss:$28 sps:$4 sm:$0xff]  }
 0x419   :  { %4008 = vmatprep.subr.bf16.mxu0 %v5552_v42  ;;  %4049 = vmatprep.subr.bf16.mxu1 %v5555_v43  ;;  %v5628_v41 = vld [vmem:[#allocation5 + $0x2e8] ss:$28 sps:$4 sm:$0xff]   ;;  %v5636_v43 = vld [vmem:[#allocation5 + $0x2b4] ss:$28 sps:$4 sm:$0xff]  }
 0x41a   :  { %v5631_v42 = vld [vmem:[#allocation5 + $0x668] ss:$28 sps:$4 sm:$0xff]  }
 0x41c   :  { %4009 = vmatpush2.bf16.msra.mxu0 %v5550_v44  ;;  %4050 = vmatpush2.bf16.msra.mxu1 %v5553_v45  ;;  %v5639_v44 = vld [vmem:[#allocation5 + $0x634] ss:$28 sps:$4 sm:$0xff]  }
 0x41d   :  { %4010 = vmatprep.subr.bf16.mxu0 %v5558_v46  ;;  %4051 = vmatprep.subr.bf16.mxu1 %v5561_v50  ;;  %v5634_v45 = vld [vmem:[#allocation5 + $0x2b0] ss:$28 sps:$4 sm:$0xff]   ;;  %v5642_v50 = vld [vmem:[#allocation5 + $0x27c] ss:$28 sps:$4 sm:$0xff]  }
 0x41e   :  { %v5637_v46 = vld [vmem:[#allocation5 + $0x630] ss:$28 sps:$4 sm:$0xff]  }
 0x420   :  { %4011 = vmatpush2.bf16.msra.mxu0 %v5556_v52  ;;  %4052 = vmatpush2.bf16.msra.mxu1 %v5559_v55  ;;  %v5645_v52 = vld [vmem:[#allocation5 + $0x5fc] ss:$28 sps:$4 sm:$0xff]  }
 0x421   :  { %4012 = vmatprep.subr.bf16.mxu0 %v5564_v56  ;;  %4053 = vmatprep.subr.bf16.mxu1 %v5567_v57  ;;  %v5640_v55 = vld [vmem:[#allocation5 + $0x278] ss:$28 sps:$4 sm:$0xff]   ;;  %v5648_v57 = vld [vmem:[#allocation5 + $0x244] ss:$28 sps:$4 sm:$0xff]  }
 0x422   :  { %v5643_v56 = vld [vmem:[#allocation5 + $0x5f8] ss:$28 sps:$4 sm:$0xff]  }
 0x424   :  { %4013 = vmatpush2.bf16.msra.mxu0 %v5562_v58  ;;  %4054 = vmatpush2.bf16.msra.mxu1 %v5565_v15  ;;  %v5651_v58 = vld [vmem:[#allocation5 + $0x5c4] ss:$28 sps:$4 sm:$0xff]  }
 0x425   :  { %4064 = vmatprep.subr.bf16.mxu0 %v5570_v59  ;;  %4105 = vmatprep.subr.bf16.mxu1 %v5573_v60  ;;  %v5646_v15 = vld [vmem:[#allocation5 + $0x240] ss:$28 sps:$4 sm:$0xff]   ;;  %v5654_v60 = vld [vmem:[#allocation5 + $0x20c] ss:$28 sps:$4 sm:$0xff]  }
 0x426   :  { %v5649_v59 = vld [vmem:[#allocation5 + $0x5c0] ss:$28 sps:$4 sm:$0xff]  }
 0x427   :  { %4015 = vmatmul.mubr.bf16.vlgmr.msra.gmra.mxu0 %v6150_v53  ;;  %4056 = vmatmul.mubr.bf16.vlgmr.msra.gmra.mxu1 %v6152_v54 }
 0x428   :  { %4065 = vmatpush1.bf16.msra.mxu0 %v5568_v61  ;;  %4096 = vmatprep.mubr.bf16.mxu0 %v6146_v48  ;;  %v5657_v61 = vld [vmem:[#allocation5 + $0x58c] ss:$28 sps:$4 sm:$0xff]  }
 0x429   :  { %4106 = vmatpush1.bf16.msra.mxu1 %v5571_v62  ;;  %4137 = vmatprep.mubr.bf16.mxu1 %v6148_v49  ;;  %v5652_v62 = vld [vmem:[#allocation5 + $0x208] ss:$28 sps:$4 sm:$0xff]  }
 0x42a   :  { %4066 = vmatprep.subr.bf16.mxu0 %v5576_v0  ;;  %4107 = vmatprep.subr.bf16.mxu1 %v5579_v6  ;;  %v5655_v0 = vld [vmem:[#allocation5 + $0x588] ss:$28 sps:$4 sm:$0xff]   ;;  %v5660_v6 = vld [vmem:[#allocation5 + $0x1d4] ss:$28 sps:$4 sm:$0xff]  }
 0x42c   :  { %4067 = vmatpush1.bf16.msra.mxu0 %v5574_v1  ;;  %v5663_v1 = vld [vmem:[#allocation5 + $0x554] ss:$28 sps:$4 sm:$0xff]  }
 0x42d   :  { %4108 = vmatpush1.bf16.msra.mxu1 %v5577_v2  ;;  %4068 = vmatprep.subr.bf16.mxu0 %v5582_v3  ;;  %v5658_v2 = vld [vmem:[#allocation5 + $0x1d0] ss:$28 sps:$4 sm:$0xff]  }
 0x42e   :  { %4109 = vmatprep.subr.bf16.mxu1 %v5585_v4  ;;  %v5661_v3 = vld [vmem:[#allocation5 + $0x550] ss:$28 sps:$4 sm:$0xff]   ;;  %v5664_v4 = vld [vmem:[#allocation5 + $0x360] ss:$28 sps:$4 sm:$0xff]  }
 0x430   :  { %4069 = vmatpush1.bf16.msra.mxu0 %v5580_v35  ;;  %v5665_v35 = vld [vmem:[#allocation5 + $0x6e0] ss:$28 sps:$4 sm:$0xff]  }
 0x431   :  { %4110 = vmatpush1.bf16.msra.mxu1 %v5583_v5  ;;  %4070 = vmatprep.subr.bf16.mxu0 %v5588_v8  ;;  %v5666_v5 = vld [vmem:[#allocation5 + $0x1a0] ss:$28 sps:$4 sm:$0xff]  }
 0x432   :  { %4111 = vmatprep.subr.bf16.mxu1 %v5591_v9  ;;  %v5667_v8 = vld [vmem:[#allocation5 + $0x520] ss:$28 sps:$4 sm:$0xff]   ;;  %v5668_v9 = vld [vmem:[#allocation5 + $0x328] ss:$28 sps:$4 sm:$0xff]  }
 0x434   :  { %4071 = vmatpush1.bf16.msra.mxu0 %v5586_v10  ;;  %v5669_v10 = vld [vmem:[#allocation5 + $0x6a8] ss:$28 sps:$4 sm:$0xff]  }
 0x435   :  { %4112 = vmatpush1.bf16.msra.mxu1 %v5589_v11  ;;  %4072 = vmatprep.subr.bf16.mxu0 %v5594_v12  ;;  %v5670_v11 = vld [vmem:[#allocation5 + $0x168] ss:$28 sps:$4 sm:$0xff]  }
 0x436   :  { %4113 = vmatprep.subr.bf16.mxu1 %v5597_v13  ;;  %v5671_v12 = vld [vmem:[#allocation5 + $0x4e8] ss:$28 sps:$4 sm:$0xff]   ;;  %v5672_v13 = vld [vmem:[#allocation5 + $0x2f0] ss:$28 sps:$4 sm:$0xff]  }
 0x438   :  { %4073 = vmatpush1.bf16.msra.mxu0 %v5592_v14  ;;  %v5673_v14 = vld [vmem:[#allocation5 + $0x670] ss:$28 sps:$4 sm:$0xff]  }
 0x439   :  { %4114 = vmatpush1.bf16.msra.mxu1 %v5595_v17  ;;  %4074 = vmatprep.subr.bf16.mxu0 %v5600_v18  ;;  %v5674_v17 = vld [vmem:[#allocation5 + $0x130] ss:$28 sps:$4 sm:$0xff]  }
 0x43a   :  { %4115 = vmatprep.subr.bf16.mxu1 %v5603_v19  ;;  %v5675_v18 = vld [vmem:[#allocation5 + $0x4b0] ss:$28 sps:$4 sm:$0xff]   ;;  %v5676_v19 = vld [vmem:[#allocation5 + $0x2b8] ss:$28 sps:$4 sm:$0xff]  }
 0x43c   :  { %4075 = vmatpush1.bf16.msra.mxu0 %v5598_v20  ;;  %v5677_v20 = vld [vmem:[#allocation5 + $0x638] ss:$28 sps:$4 sm:$0xff]  }
 0x43d   :  { %4116 = vmatpush1.bf16.msra.mxu1 %v5601_v21  ;;  %4076 = vmatprep.subr.bf16.mxu0 %v5606_v22  ;;  %v5678_v21 = vld [vmem:[#allocation5 + $0xf8] ss:$28 sps:$4 sm:$0xff]   ;;  %v5680_v22 = vld [vmem:[#allocation5 + $0x280] ss:$28 sps:$4 sm:$0xff]  }
 0x43e   :  { %4117 = vmatprep.subr.bf16.mxu1 %v5609_v23  ;;  %v5681_v23 = vld [vmem:[#allocation5 + $0x600] ss:$28 sps:$4 sm:$0xff]  }
 0x440   :  { %4077 = vmatpush1.bf16.msra.mxu0 %v5604_v24  ;;  %v5683_v24 = vld [vmem:[#allocation5 + $0x440] ss:$28 sps:$4 sm:$0xff]  }
 0x441   :  { %4118 = vmatpush1.bf16.msra.mxu1 %v5607_v25  ;;  %4078 = vmatprep.subr.bf16.mxu0 %v5612_v26  ;;  %v5684_v25 = vld [vmem:[#allocation5 + $0x248] ss:$28 sps:$4 sm:$0xff]  }
 0x442   :  { %4119 = vmatprep.subr.bf16.mxu1 %v5615_v27  ;;  %v5685_v26 = vld [vmem:[#allocation5 + $0x5c8] ss:$28 sps:$4 sm:$0xff]  }
 0x443   :  { %v5686_v27 = vld [vmem:[#allocation5 + $0x88] ss:$28 sps:$4 sm:$0xff]  }
 0x444   :  { %4079 = vmatpush1.bf16.msra.mxu0 %v5610_v16  ;;  %v5687_v16 = vld [vmem:[#allocation5 + $0x408] ss:$28 sps:$4 sm:$0xff]  }
 0x445   :  { %4120 = vmatpush1.bf16.msra.mxu1 %v5613_v28  ;;  %4080 = vmatprep.subr.bf16.mxu0 %v5618_v29  ;;  %v5688_v28 = vld [vmem:[#allocation5 + $0x210] ss:$28 sps:$4 sm:$0xff]  }
 0x446   :  { %4121 = vmatprep.subr.bf16.mxu1 %v5621_v30  ;;  %v5689_v29 = vld [vmem:[#allocation5 + $0x590] ss:$28 sps:$4 sm:$0xff]  }
 0x447   :  { %v5690_v30 = vld [vmem:[#allocation5 + $0x50] ss:$28 sps:$4 sm:$0xff]  }
 0x448   :  { %4081 = vmatpush2.bf16.msra.mxu0 %v5616_v31  ;;  %v5691_v31 = vld [vmem:[#allocation5 + $0x3d0] ss:$28 sps:$4 sm:$0xff]  }
 0x449   :  { %4122 = vmatpush2.bf16.msra.mxu1 %v5619_v32  ;;  %4082 = vmatprep.subr.bf16.mxu0 %v5624_v7  ;;  %v5692_v32 = vld [vmem:[#allocation5 + $0x1d8] ss:$28 sps:$4 sm:$0xff]  }
 0x44a   :  { %4123 = vmatprep.subr.bf16.mxu1 %v5627_v36  ;;  %v5693_v7 = vld [vmem:[#allocation5 + $0x558] ss:$28 sps:$4 sm:$0xff]  }
 0x44b   :  { %v5694_v36 = vld [vmem:[#allocation5 + $0x18] ss:$28 sps:$4 sm:$0xff]  }
 0x44c   :  { %4083 = vmatpush2.bf16.msra.mxu0 %v5622_v37  ;;  %v5695_v37 = vld [vmem:[#allocation5 + $0x398] ss:$28 sps:$4 sm:$0xff]  }
 0x44d   :  { %4124 = vmatpush2.bf16.msra.mxu1 %v5625_v38  ;;  %4084 = vmatprep.subr.bf16.mxu0 %v5630_v39  ;;  %v6173_v38 = vld [vmem:[%s6201_s9] sm:$0xff]  ;;  %s5801_s9 = smov [#allocation7]  }
 0x44e   :  { %4125 = vmatprep.subr.bf16.mxu1 %v5633_v40  ;;  %v2716_v39 = vrot.slane %v6173_v38, %v6014_v51  ;;  %v2720_v40 = vrot.slane %v6173_v38, %v6020_v34  ;;  %s4307_s18 = sshll.u32 %s5801_s9, 4  ;;  %s4308_s18 = int_to_ptr.vmem [resolvable:$true] %s4307_s18 }
 0x44f   :  { %s5767_s19 = scalar_lea.vmem %s4308_s18, 448  ;;  %p5772_p11 = scmp.lt.s32.totalorder %s4308_s18, %s4308_s18 }
 0x450   :  { %4085 = vmatpush2.bf16.msra.mxu0 %v5628_v41  ;;  %p5768_p10 = scmp.ne.s32.totalorder %s4308_s18, %s5767_s19  ;;  %p5773_p12 = scmp.lt.s32.totalorder %s5767_s19, %s5767_s19 }
 0x451   :  { %4126 = vmatpush2.bf16.msra.mxu1 %v5631_v42  ;;  %4086 = vmatprep.subr.bf16.mxu0 %v5636_v43 }
 0x452   :  { %4127 = vmatprep.subr.bf16.mxu1 %v5639_v44  ;;  %p5774_p13 = por %p5773_p12, %p5772_p11 }
 0x454   :  { %4087 = vmatpush2.bf16.msra.mxu0 %v5634_v45  ;;  %p5775_p0 = pnand %p5774_p13, %p5768_p10 }
 0x455   :  { %4128 = vmatpush2.bf16.msra.mxu1 %v5637_v46  ;;  %4088 = vmatprep.subr.bf16.mxu0 %v5642_v50 }
 0x456   :  { %4129 = vmatprep.subr.bf16.mxu1 %v5645_v52 }
 0x458   :  { %4089 = vmatpush2.bf16.msra.mxu0 %v5640_v55 }
 0x459   :  { %4130 = vmatpush2.bf16.msra.mxu1 %v5643_v56  ;;  %4090 = vmatprep.subr.bf16.mxu0 %v5648_v57 }
 0x45a   :  { %4131 = vmatprep.subr.bf16.mxu1 %v5651_v58 }
 0x45c   :  { %4091 = vmatpush2.bf16.msra.mxu0 %v5646_v15 }
 0x45d   :  { %4132 = vmatpush2.bf16.msra.mxu1 %v5649_v59  ;;  %4092 = vmatprep.subr.bf16.mxu0 %v5654_v60 }
 0x45e   :  { %4133 = vmatprep.subr.bf16.mxu1 %v5657_v61 }
 0x460   :  { %4093 = vmatpush2.bf16.msra.mxu0 %v5652_v62 }
 0x461   :  { %4134 = vmatpush2.bf16.msra.mxu1 %v5655_v0  ;;  %4094 = vmatprep.subr.bf16.mxu0 %v5660_v6  ;;  %v2724_v0 = vrot.slane %v6173_v38, %v6026_v47  ;;  %v2728_v6 = vrot.slane %v6173_v38, %v6029_v63 }
 0x462   :  { %4135 = vmatprep.subr.bf16.mxu1 %v5663_v1 }
 0x464   :  { %4095 = vmatpush2.bf16.msra.mxu0 %v5658_v2 }
 0x465   :  { %4136 = vmatpush2.bf16.msra.mxu1 %v5661_v3  ;;  %4900 = vmatprep.subr.bf16.mxu0 %v5664_v4 }
 0x466   :  { %4922 = vmatprep.subr.bf16.mxu1 %v5665_v35 }
 0x467   :  { %4097 = vmatmul.mubr.bf16.vlgmr.msra.gmra.mxu0 %v6150_v53 }
 0x468   :  { %4138 = vmatmul.mubr.bf16.vlgmr.msra.gmra.mxu1 %v6152_v54  ;;  %4901 = vmatpush3.bf16.msra.mxu0 %v5666_v5 }
 0x469   :  { %4178 = vmatprep.mubr.bf16.mxu0 %v6146_v48  ;;  %4923 = vmatpush3.bf16.msra.mxu1 %v5667_v8  ;;  %v5679_v48 = vld [vmem:[#allocation5 + $0x478] ss:$28 sps:$4 sm:$0xff]  }
 0x46a   :  { %4218 = vmatprep.mubr.bf16.mxu1 %v6148_v49  ;;  %4902 = vmatprep.subr.bf16.mxu0 %v5668_v9  ;;  %v5682_v49 = vld [vmem:[#allocation5 + $0xc0] ss:$28 sps:$4 sm:$0xff]  }
 0x46b   :  { %4924 = vmatprep.subr.bf16.mxu1 %v5669_v10 }
 0x46c   :  { %4903 = vmatpush3.bf16.msra.mxu0 %v5670_v11 }
 0x46d   :  { %4925 = vmatpush3.bf16.msra.mxu1 %v5671_v12  ;;  %4904 = vmatprep.subr.bf16.mxu0 %v5672_v13 }
 0x46e   :  { %4926 = vmatprep.subr.bf16.mxu1 %v5673_v14 }
 0x470   :  { %4905 = vmatpush3.bf16.msra.mxu0 %v5674_v17 }
 0x471   :  { %4927 = vmatpush3.bf16.msra.mxu1 %v5675_v18  ;;  %4906 = vmatprep.subr.bf16.mxu0 %v5676_v19 }
 0x472   :  { %4928 = vmatprep.subr.bf16.mxu1 %v5677_v20 }
 0x474   :  { %4907 = vmatpush3.bf16.msra.mxu0 %v5678_v21 }
 0x475   :  { %4929 = vmatpush3.bf16.msra.mxu1 %v5679_v48  ;;  %4908 = vmatprep.subr.bf16.mxu0 %v5680_v22  ;;  %v2731_v22 = vsub.s32 4, %v6011_v33 }
 0x476   :  { %4930 = vmatprep.subr.bf16.mxu1 %v5681_v23  ;;  %v2735_v23 = vsub.s32 5, %v6011_v33 }
 0x478   :  { %4909 = vmatpush3.bf16.msra.mxu0 %v5682_v49  ;;  %v2732_v49 = vrot.slane %v6173_v38, %v2731_v22 }
 0x479   :  { %4931 = vmatpush3.bf16.msra.mxu1 %v5683_v24  ;;  %4910 = vmatprep.subr.bf16.mxu0 %v5684_v25  ;;  %v2736_v24 = vrot.slane %v6173_v38, %v2735_v23 }
 0x47a   :  { %4932 = vmatprep.subr.bf16.mxu1 %v5685_v26 }
 0x47c   :  { %4911 = vmatpush3.bf16.msra.mxu0 %v5686_v27 }
 0x47d   :  { %4933 = vmatpush3.bf16.msra.mxu1 %v5687_v16  ;;  %4912 = vmatprep.subr.bf16.mxu0 %v5688_v28 }
 0x47e   :  { %4934 = vmatprep.subr.bf16.mxu1 %v5689_v29 }
 0x480   :  { %4913 = vmatpush3.bf16.msra.mxu0 %v5690_v30 }
 0x481   :  { %4935 = vmatpush3.bf16.msra.mxu1 %v5691_v31  ;;  %4914 = vmatprep.subr.bf16.mxu0 %v5692_v32 }
 0x482   :  { %4936 = vmatprep.subr.bf16.mxu1 %v5693_v7 }
 0x484   :  { %4915 = vmatpush3.bf16.msra.mxu0 %v5694_v36 }
 0x485   :  { %4937 = vmatpush3.bf16.msra.mxu1 %v5695_v37 }
 0x487   :  { %4179 = vmatmul.mubr.bf16.vlgmr.msra.gmra.mxu0 %v6150_v53 }
 0x488   :  { %4219 = vmatmul.mubr.bf16.vlgmr.msra.gmra.mxu1 %v6152_v54 }
 0x4a7   :  { %v3934_v41 = vpop.f32.mrf.mxu0  ;;  %v3975_v42 = vpop.f32.mrf.mxu1 }
 0x4a8   :  { %v3935_v43 = vadd.f32 %v3934_v41, %v2716_v39 }
 0x4a9   :  { %v3936_v44 = vpop.f32.mrf.mxu0  ;;  %v3977_v45 = vpop.f32.mrf.mxu1 }
 0x4aa   :  { %v3976_v46 = vadd.f32 %v3975_v42, %v3935_v43  ;;  %v3937_v53 = vadd.f32 %v3936_v44, %v2720_v40 }
 0x4ab   :  { %v3938_v50 = vpop.f32.mrf.mxu0  ;;  %v3979_v54 = vpop.f32.mrf.mxu1 }
 0x4ac   :  { %v4841_v52 = vmul.f32 -1.442695, %v3976_v46  ;;  %v3978_v55 = vadd.f32 %v3977_v45, %v3937_v53  ;;  %v2739_v45 = vsub.s32 6, %v6011_v33 }
 0x4ad   :  { %v3939_v56 = vpop.f32.mrf.mxu0  ;;  %v3980_v57 = vpop.f32.mrf.mxu1 }
 0x4ae   :  { %5698 = vpow2.f32 %v4841_v52  ;;  %v4842_v58 = vmul.f32 -1.442695, %v3978_v55  ;;  %v2740_v50 = vrot.slane %v6173_v38, %v2739_v45 }
 0x4b0   :  { %5700 = vpow2.f32 %v4842_v58 }
 0x4bb   :  { %v5699_v51 = vpop.eup %5698 }
 0x4bc   :  { %v4247_v15 = vadd.f32 1.0, %v5699_v51 }
 0x4bd   :  { %v5701_v59 = vpop.eup %5700 }
 0x4be   :  { %v4248_v34 = vadd.f32 1.0, %v5701_v59  ;;  %5702 = vrcp.f32 %v4247_v15 }
 0x4c0   :  { %5704 = vrcp.f32 %v4248_v34 }
 0x4cb   :  { %v5703_v60 = vpop.eup %5702 }
 0x4cd   :  { %v5705_v61 = vpop.eup %5704 }
 0x4ce   :  { %v4852_v62 = vpack.c.bf16 %v5705_v61, %v5703_v60 }
 0x4d0   :  { %4297 = vst [vmem:[#allocation7] sm:$0xff] %v4852_v62 }
 0x4e7   :  { %v4016_v1 = vpop.f32.mrf.mxu0  ;;  %v4057_v2 = vpop.f32.mrf.mxu1 }
 0x4e8   :  { %v4017_v3 = vadd.f32 %v4016_v1, %v2724_v0 }
 0x4e9   :  { %v4018_v4 = vpop.f32.mrf.mxu0  ;;  %v4059_v35 = vpop.f32.mrf.mxu1 }
 0x4ea   :  { %v4058_v5 = vadd.f32 %v4057_v2, %v4017_v3  ;;  %v4019_v8 = vadd.f32 %v4018_v4, %v2728_v6 }
 0x4eb   :  { %v4020_v9 = vpop.f32.mrf.mxu0  ;;  %v4061_v10 = vpop.f32.mrf.mxu1 }
 0x4ec   :  { %v4843_v11 = vmul.f32 -1.442695, %v4058_v5  ;;  %v4060_v12 = vadd.f32 %v4059_v35, %v4019_v8 }
 0x4ed   :  { %v4021_v13 = vpop.f32.mrf.mxu0  ;;  %v4062_v14 = vpop.f32.mrf.mxu1 }
 0x4ee   :  { %5706 = vpow2.f32 %v4843_v11  ;;  %v4844_v17 = vmul.f32 -1.442695, %v4060_v12 }
 0x4f0   :  { %5708 = vpow2.f32 %v4844_v17 }
 0x4fb   :  { %v5707_v47 = vpop.eup %5706 }
 0x4fc   :  { %v4249_v18 = vadd.f32 1.0, %v5707_v47 }
 0x4fd   :  { %v5709_v19 = vpop.eup %5708 }
 0x4fe   :  { %v4250_v63 = vadd.f32 1.0, %v5709_v19  ;;  %5710 = vrcp.f32 %v4249_v18 }
 0x500   :  { %5712 = vrcp.f32 %v4250_v63 }
 0x50b   :  { %v5711_v20 = vpop.eup %5710 }
 0x50d   :  { %v5713_v21 = vpop.eup %5712 }
 0x50e   :  { %v4853_v48 = vpack.c.bf16 %v5713_v21, %v5711_v20 }
 0x510   :  { %4298 = vst [vmem:[#allocation7 + $0x8] sm:$0xff] %v4853_v48 }
 0x527   :  { %v4098_v25 = vpop.f32.mrf.mxu0 }
 0x528   :  { %v4099_v26 = vadd.f32 %v4098_v25, %v2732_v49  ;;  %v4139_v27 = vpop.f32.mrf.mxu1 }
 0x529   :  { %v4100_v16 = vpop.f32.mrf.mxu0 }
 0x52a   :  { %v4140_v28 = vadd.f32 %v4139_v27, %v4099_v26  ;;  %v4101_v29 = vadd.f32 %v4100_v16, %v2736_v24  ;;  %v4141_v30 = vpop.f32.mrf.mxu1 }
 0x52b   :  { %v4102_v31 = vpop.f32.mrf.mxu0 }
 0x52c   :  { %v4845_v32 = vmul.f32 -1.442695, %v4140_v28  ;;  %v4142_v7 = vadd.f32 %v4141_v30, %v4101_v29  ;;  %v4143_v36 = vpop.f32.mrf.mxu1 }
 0x52d   :  { %v4103_v37 = vpop.f32.mrf.mxu0 }
 0x52e   :  { %5714 = vpow2.f32 %v4845_v32  ;;  %v4846_v39 = vmul.f32 -1.442695, %v4142_v7  ;;  %v4144_v40 = vpop.f32.mrf.mxu1 }
 0x530   :  { %5716 = vpow2.f32 %v4846_v39 }
 0x53b   :  { %v5715_v41 = vpop.eup %5714 }
 0x53c   :  { %v4251_v42 = vadd.f32 1.0, %v5715_v41 }
 0x53d   :  { %v5717_v43 = vpop.eup %5716 }
 0x53e   :  { %v4252_v44 = vadd.f32 1.0, %v5717_v43  ;;  %5718 = vrcp.f32 %v4251_v42 }
 0x540   :  { %5720 = vrcp.f32 %v4252_v44 }
 0x547   :  { %v4916_v46 = vpop.f32.mrf.mxu0 }
 0x548   :  { %v4938_v53 = vpop.f32.mrf.mxu1 }
 0x549   :  { %v4917_v54 = vpop.f32.mrf.mxu0 }
 0x54a   :  { %v4918_v52 = vadd.f32 %v4917_v54, %v4916_v46  ;;  %v4939_v55 = vpop.f32.mrf.mxu1 }
 0x54b   :  { %v4919_v56 = vpop.f32.mrf.mxu0  ;;  %v5719_v57 = vpop.eup %5718  ;;  %v4940_v51 = vadd.f32 %v4939_v55, %v4938_v53 }
 0x54c   :  { %v4181_v58 = vadd.f32 %v4918_v52, %v2740_v50  ;;  %v4941_v15 = vpop.f32.mrf.mxu1 }
 0x54d   :  { %v5721_v59 = vpop.eup %5720  ;;  %v4920_v34 = vpop.f32.mrf.mxu0 }
 0x54e   :  { %v4221_v60 = vadd.f32 %v4940_v51, %v4181_v58  ;;  %v4942_v61 = vpop.f32.mrf.mxu1  ;;  %v4854_v62 = vpack.c.bf16 %v5721_v59, %v5719_v57 }
 0x550   :  { %v4847_v0 = vmul.f32 -1.442695, %v4221_v60  ;;  %4299 = vst [vmem:[#allocation7 + $0x10] sm:$0xff] %v4854_v62 }
 0x552   :  { %5722 = vpow2.f32 %v4847_v0 }
 0x55f   :  { %v5723_v33 = vpop.eup %5722 }
 0x560   :  { %v4253_v6 = vadd.f32 1.0, %v5723_v33 }
 0x562   :  { %5724 = vrcp.f32 %v4253_v6 }
 0x56f   :  { %v5725_v38 = vpop.eup %5724 }
 0x570   :  { %v4855_v1 = vpack.c.bf16 %v5725_v38, %v5725_v38 }
 0x572   :  { %4300 = vst [vmem:[#allocation7 + $0x18] sm:$0xf] %v4855_v1 }
 0x573   :  { %5778 = shalt.err (!%p5775_p0)
}
 0x574   :  { %4310 = dma.vmem_to_hbm [thread:$0]  %s4308_s18, 448, %s6202_s10, [#allocation4]  }
 0x575   :  { %5791 = dma.done.wait [#allocation4], 448  }
 0x576   :  { %5792 = vsyncadd [#allocation4], 4294966848 }
 0x577   :  { %4318 = vsyncpa [#allocation3], 1 }
 0x578   :  { %4319 = vsyncpa [#allocation6], 1 }
 0x579   :  { %4320 = vsyncpa [#allocation4], 1 }

</bundles_post_ra>
